<compile_context>
chip_gen: v7x
topology: tpu7x:2x2x1
jax: 0.10.0
libtpu: 0.0.40
codegen_flags: <defaults>
</compile_context>

<pallas_src>
import numpy as np
import jax
import jax.numpy as jnp
from jax.experimental import pallas as pl
from jax.experimental.pallas import tpu as pltpu

EPS = 1e-5


# --------------------------------------------------------------------------
# Fused Pallas kernel: whole network for one image per grid step
# --------------------------------------------------------------------------
def _fused_cnn_kernel(x_ref, mb1_ref, b1_ref, mb2_ref, b2_ref, mb3_ref, b3_ref,
                      wl_ref, lb_ref, o_ref, act1_ref, act2_ref):
    # x_ref   : (32, 32)                 input image (single channel)
    # mbK_ref : (2, 3, W*Cin, Wp*Cout)   banded conv weights (BN folded); slab
    #                                    [j, kh] produces conv columns wo = 2*wp + j
    # bK_ref  : (1, Wp*Cout)             conv bias (BN folded), tiled over wp
    # wl_ref  : (2, 64)                  head weights (BN4 folded, layout-permuted)
    # lb_ref  : (1, 1)                   head bias (BN4 folded)
    # o_ref   : (1, 1)                   sigmoid output for this image
    # act1_ref: (15, 120) VMEM scratch   stage-1 pooled activation, channels-last
    # act2_ref: (6, 96)   VMEM scratch   stage-2 pooled activation, channels-last

    def conv_pool_relu(read_rows, mb_ref, b_ref, hp_count, store_row):
        # conv3x3 (BN folded) -> maxpool2x2 -> relu, emitting hp_count output rows.
        n_rows = 2 * hp_count          # conv-output rows consumed by the pool
        acc = [None, None]             # one accumulator per pool column parity j
        for kh in range(3):
            slab = read_rows(kh, n_rows)                       # (2*Hp, W*Cin)
            for j in range(2):
                t = jnp.dot(slab, mb_ref[j, kh],
                            preferred_element_type=jnp.float32)
                acc[j] = t if acc[j] is None else acc[j] + t
        # W-direction of the pool: max over the two column parities, then bias.
        yw = jnp.maximum(acc[0], acc[1]) + b_ref[...]          # (2*Hp, Wp*Cout)
        # H-direction of the pool: max over adjacent row pairs, then ReLU.
        for hp in range(hp_count):
            row = jnp.maximum(yw[2 * hp:2 * hp + 1, :],
                              yw[2 * hp + 1:2 * hp + 2, :])
            store_row(hp, jnp.maximum(row, 0.0))

    def store1(hp, v):
        act1_ref[pl.ds(hp, 1), :] = v

    def store2(hp, v):
        act2_ref[pl.ds(hp, 1), :] = v

    feats = []

    def store3(hp, v):
        feats.append(v)

    # stage 1: (32, 32) x 1ch  -> act1 (15, 15*8)
    conv_pool_relu(lambda kh, n: x_ref[pl.ds(kh, n), :], mb1_ref, b1_ref, 15, store1)
    # stage 2: (15, 15*8)      -> act2 (6, 6*16)
    conv_pool_relu(lambda kh, n: act1_ref[pl.ds(kh, n), :], mb2_ref, b2_ref, 6, store2)
    # stage 3: (6, 6*16)       -> two (1, 2*32) rows kept in registers
    conv_pool_relu(lambda kh, n: act2_ref[pl.ds(kh, n), :], mb3_ref, b3_ref, 2, store3)

    # head: BN4 (folded) + flatten + dropout(eval=identity) + Linear(128,1) + sigmoid
    z = lb_ref[...]                                            # (1, 1)
    for hp in range(2):
        z = z + jnp.sum(feats[hp] * wl_ref[pl.ds(hp, 1), :],
                        axis=1, keepdims=True)
    o_ref[...] = 1.0 / (1.0 + jnp.exp(-z))


# --------------------------------------------------------------------------
# pallas_call wrapper
# --------------------------------------------------------------------------
def cnn_forward(x, C):
    x = x.reshape(-1, 32, 32).astype(jnp.float32)   # torch.reshape(x, (-1,1,32,32))
    N = x.shape[0]
    out = pl.pallas_call(
        _fused_cnn_kernel,
        out_shape=jax.ShapeDtypeStruct((N, 1, 1), jnp.float32),
        grid=(N,),
        in_specs=[
            pl.BlockSpec((None, 32, 32), lambda i: (i, 0, 0)),     # per-image input
            pl.BlockSpec((2, 3, 32, 120), lambda i: (0, 0, 0, 0)),  # stage-1 band
            pl.BlockSpec((1, 120), lambda i: (0, 0)),               # stage-1 bias
            pl.BlockSpec((2, 3, 120, 96), lambda i: (0, 0, 0, 0)),  # stage-2 band
            pl.BlockSpec((1, 96), lambda i: (0, 0)),                # stage-2 bias
            pl.BlockSpec((2, 3, 96, 64), lambda i: (0, 0, 0, 0)),   # stage-3 band
            pl.BlockSpec((1, 64), lambda i: (0, 0)),                # stage-3 bias
            pl.BlockSpec((2, 64), lambda i: (0, 0)),                # head weights
            pl.BlockSpec((1, 1), lambda i: (0, 0)),                 # head bias
        ],
        out_specs=pl.BlockSpec((None, 1, 1), lambda i: (i, 0, 0)),
        scratch_shapes=[
            pltpu.VMEM((15, 120), jnp.float32),   # stage-1 pooled activation
            pltpu.VMEM((6, 96), jnp.float32),     # stage-2 pooled activation
        ],
        compiler_params=pltpu.CompilerParams(dimension_semantics=("parallel",)),
    )(x, C["mb1"], C["b1"], C["mb2"], C["b2"], C["mb3"], C["b3"], C["wl"], C["lb"])
    return out.reshape(N, 1)


# --------------------------------------------------------------------------
# Host-side preprocessing: fold eval-mode BN into weights, build banded matrices
# --------------------------------------------------------------------------
def fold_params(P):
    Pn = {k: np.asarray(v, dtype=np.float32) for k, v in P.items()}
    C = {}
    stages = [
        # (layer, W_in, Cin, Cout, Wp_out)
        (1, 32, 1, 8, 15),
        (2, 15, 8, 16, 6),
        (3, 6, 16, 32, 2),
    ]
    for li, W, Cin, Cout, Wp in stages:
        w = Pn[f"conv{li}_w"]                               # (Cout, Cin, 3, 3)
        b = Pn[f"conv{li}_b"]                               # (Cout,)
        g, bt, m, v = (Pn[f"bn{li}_g"], Pn[f"bn{li}_b"],
                       Pn[f"bn{li}_m"], Pn[f"bn{li}_v"])
        s = g / np.sqrt(v + EPS)                            # BN scale per input ch
        sh = bt - m * s                                     # BN shift per input ch
        wf = w * s[None, :, None, None]                     # conv(BN(x)) = conv'(x)+b'
        bf = b + np.einsum("oikl,i->o", w, sh)
        # banded matrix: rows = (w_in, ci) merged, cols = (wp, co) merged;
        # slab [j, kh] holds kernel-row-kh weights producing conv column wo = 2*wp+j.
        mb = np.zeros((2, 3, W * Cin, Wp * Cout), np.float32)
        for j in range(2):
            for kh in range(3):
                for wp in range(Wp):
                    for kw in range(3):
                        w_in = 2 * wp + j + kw
                        mb[j, kh, w_in * Cin:(w_in + 1) * Cin,
                           wp * Cout:(wp + 1) * Cout] = wf[:, :, kh, kw].T
        C[f"mb{li}"] = jnp.asarray(mb)
        C[f"b{li}"] = jnp.asarray(np.tile(bf, Wp)[None, :])

    # head: fold BN4 into Linear(128, 1); permute torch NCHW-flatten order
    # (c*4 + h*2 + w) into the kernel's (hp, wp*32 + co) layout.
    g, bt, m, v = Pn["bn4_g"], Pn["bn4_b"], Pn["bn4_m"], Pn["bn4_v"]
    s4 = g / np.sqrt(v + EPS)
    sh4 = bt - m * s4
    lw = Pn["lin_w"][0]                                     # (128,)
    lwf = lw * np.repeat(s4, 4)
    lbf = Pn["lin_b"][0] + np.sum(lw * np.repeat(sh4, 4))
    wl = np.zeros((2, 2 * 32), np.float32)
    for co in range(32):
        for hp in range(2):
            for wp in range(2):
                wl[hp, wp * 32 + co] = lwf[co * 4 + hp * 2 + wp]
    C["wl"] = jnp.asarray(wl)
    C["lb"] = jnp.asarray(np.array([[lbf]], np.float32))
    return C


# --------------------------------------------------------------------------
# Plain-JAX reference (for validation)
# --------------------------------------------------------------------------
def reference_forward(x, P):
    def bn(h, g, b, m, v):
        s = g / jnp.sqrt(v + EPS)
        return h * s[None, :, None, None] + (b - m * s)[None, :, None, None]

    def conv(h, w, b):
        y = jax.lax.conv_general_dilated(
            h, w, window_strides=(1, 1), padding="VALID",
            dimension_numbers=("NCHW", "OIHW", "NCHW"))
        return y + b[None, :, None, None]

    def pool(h):
        return jax.lax.reduce_window(h, -jnp.inf, jax.lax.max,
                                     (1, 1, 2, 2), (1, 1, 2, 2), "VALID")

    h = x.reshape(-1, 1, 32, 32).astype(jnp.float32)
    h = bn(h, P["bn1_g"], P["bn1_b"], P["bn1_m"], P["bn1_v"])
    h = jax.nn.relu(pool(conv(h, P["conv1_w"], P["conv1_b"])))
    h = bn(h, P["bn2_g"], P["bn2_b"], P["bn2_m"], P["bn2_v"])
    h = jax.nn.relu(pool(conv(h, P["conv2_w"], P["conv2_b"])))
    h = bn(h, P["bn3_g"], P["bn3_b"], P["bn3_m"], P["bn3_v"])
    h = jax.nn.relu(pool(conv(h, P["conv3_w"], P["conv3_b"])))
    h = bn(h, P["bn4_g"], P["bn4_b"], P["bn4_m"], P["bn4_v"])
    flat = h.reshape(h.shape[0], -1)
    return jax.nn.sigmoid(flat @ P["lin_w"].T + P["lin_b"])


# --------------------------------------------------------------------------
# Deterministic parameter init (shapes from CNN.__init__)
# --------------------------------------------------------------------------
def init_params(key):
    ks = list(jax.random.split(key, 24))
    nxt = iter(ks)

    def n(shape, scale=0.1):
        return scale * jax.random.normal(next(nxt), shape, jnp.float32)

    P = {}
    for li, shp in zip((1, 2, 3), ((8, 1, 3, 3), (16, 8, 3, 3), (32, 16, 3, 3))):
        P[f"conv{li}_w"] = n(shp)
        P[f"conv{li}_b"] = n((shp[0],))
    for li, c in zip((1, 2, 3, 4), (1, 8, 16, 32)):
        P[f"bn{li}_g"] = 1.0 + n((c,))
        P[f"bn{li}_b"] = n((c,))
        P[f"bn{li}_m"] = n((c,))
        P[f"bn{li}_v"] = 1.0 + 0.1 * jax.random.uniform(next(nxt), (c,), jnp.float32)
    P["lin_w"] = n((1, 128))
    P["lin_b"] = n((1,))
    return P


if __name__ == "__main__":
    key = jax.random.PRNGKey(0)
    pkey, xkey = jax.random.split(key)
    P = init_params(pkey)
    x = jax.random.normal(xkey, (2, 1, 32, 32), jnp.float32)

    C = fold_params(P)                      # host-side BN folding / band building
    out = jax.jit(cnn_forward)(x, C)
    out = jax.block_until_ready(out)

    ref = reference_forward(x, P)
    np.testing.assert_allclose(np.asarray(out), np.asarray(ref), rtol=2e-4, atol=2e-4)
    assert out.shape == (2, 1) and out.dtype == jnp.float32
    print("KERNEL_OK")
</pallas_src>

<mosaic_0001>
module attributes {stable_mosaic.version = 11 : i64} {
  func.func @_fused_cnn_kernel(%arg0: i32, %arg1: memref<1x32x32xf32, #tpu.memory_space<vmem>>, %arg2: memref<2x3x32x120xf32, #tpu.memory_space<vmem>>, %arg3: memref<1x120xf32, #tpu.memory_space<vmem>>, %arg4: memref<2x3x120x96xf32, #tpu.memory_space<vmem>>, %arg5: memref<1x96xf32, #tpu.memory_space<vmem>>, %arg6: memref<2x3x96x64xf32, #tpu.memory_space<vmem>>, %arg7: memref<1x64xf32, #tpu.memory_space<vmem>>, %arg8: memref<2x64xf32, #tpu.memory_space<vmem>>, %arg9: memref<1x1xf32, #tpu.memory_space<vmem>>, %arg10: memref<1x1x1xf32, #tpu.memory_space<vmem>>, %arg11: memref<15x120xf32, #tpu.memory_space<vmem>>, %arg12: memref<6x96xf32, #tpu.memory_space<vmem>>) attributes {dimension_semantics = [#tpu.dimension_semantics<parallel>], iteration_bounds = array<i64: 2>, scalar_prefetch = 0 : i64, scratch_operands = 2 : i64, tpu.core_type = #tpu.core_type<tc>, window_params = [{transform_indices = @transform_0, window_bounds = array<i64: 1, 32, 32>}, {pipeline_mode = #tpu.pipeline_mode<synchronous>, transform_indices = @transform_1, window_bounds = array<i64: 2, 3, 32, 120>}, {pipeline_mode = #tpu.pipeline_mode<synchronous>, transform_indices = @transform_2, window_bounds = array<i64: 1, 120>}, {pipeline_mode = #tpu.pipeline_mode<synchronous>, transform_indices = @transform_3, window_bounds = array<i64: 2, 3, 120, 96>}, {pipeline_mode = #tpu.pipeline_mode<synchronous>, transform_indices = @transform_4, window_bounds = array<i64: 1, 96>}, {pipeline_mode = #tpu.pipeline_mode<synchronous>, transform_indices = @transform_5, window_bounds = array<i64: 2, 3, 96, 64>}, {pipeline_mode = #tpu.pipeline_mode<synchronous>, transform_indices = @transform_6, window_bounds = array<i64: 1, 64>}, {pipeline_mode = #tpu.pipeline_mode<synchronous>, transform_indices = @transform_7, window_bounds = array<i64: 2, 64>}, {pipeline_mode = #tpu.pipeline_mode<synchronous>, transform_indices = @transform_8, window_bounds = array<i64: 1, 1>}, {transform_indices = @transform_9, window_bounds = array<i64: 1, 1, 1>}]} {
    %c0 = arith.constant 0 : index
    %c0_0 = arith.constant 0 : index
    %c0_1 = arith.constant 0 : index
    %0 = vector.load %arg1[%c0, %c0_0, %c0_1] : memref<1x32x32xf32, #tpu.memory_space<vmem>>, vector<1x30x32xf32>
    %1 = vector.shape_cast %0 : vector<1x30x32xf32> to vector<30x32xf32>
    %c0_2 = arith.constant 0 : index
    %c0_3 = arith.constant 0 : index
    %c0_4 = arith.constant 0 : index
    %c0_5 = arith.constant 0 : index
    %2 = vector.load %arg2[%c0_2, %c0_3, %c0_4, %c0_5] : memref<2x3x32x120xf32, #tpu.memory_space<vmem>>, vector<1x1x32x120xf32>
    %3 = vector.shape_cast %2 : vector<1x1x32x120xf32> to vector<32x120xf32>
    %cst = arith.constant dense<0.000000e+00> : vector<30x120xf32>
    %4 = tpu.matmul %1, %3, %cst {dimension_numbers = #tpu.dot_dimension_numbers<[1], [0], [0], [1], [0, 0, 1, 1], [], []>} : vector<30x32xf32>, vector<32x120xf32>, vector<30x120xf32> -> vector<30x120xf32>
    %c1 = arith.constant 1 : index
    %c0_6 = arith.constant 0 : index
    %c0_7 = arith.constant 0 : index
    %c0_8 = arith.constant 0 : index
    %5 = vector.load %arg2[%c1, %c0_6, %c0_7, %c0_8] : memref<2x3x32x120xf32, #tpu.memory_space<vmem>>, vector<1x1x32x120xf32>
    %6 = vector.shape_cast %5 : vector<1x1x32x120xf32> to vector<32x120xf32>
    %cst_9 = arith.constant dense<0.000000e+00> : vector<30x120xf32>
    %7 = tpu.matmul %1, %6, %cst_9 {dimension_numbers = #tpu.dot_dimension_numbers<[1], [0], [0], [1], [0, 0, 1, 1], [], []>} : vector<30x32xf32>, vector<32x120xf32>, vector<30x120xf32> -> vector<30x120xf32>
    %c0_10 = arith.constant 0 : index
    %c1_11 = arith.constant 1 : index
    %c0_12 = arith.constant 0 : index
    %8 = vector.load %arg1[%c0_10, %c1_11, %c0_12] : memref<1x32x32xf32, #tpu.memory_space<vmem>>, vector<1x30x32xf32>
    %9 = vector.shape_cast %8 : vector<1x30x32xf32> to vector<30x32xf32>
    %c0_13 = arith.constant 0 : index
    %c1_14 = arith.constant 1 : index
    %c0_15 = arith.constant 0 : index
    %c0_16 = arith.constant 0 : index
    %10 = vector.load %arg2[%c0_13, %c1_14, %c0_15, %c0_16] : memref<2x3x32x120xf32, #tpu.memory_space<vmem>>, vector<1x1x32x120xf32>
    %11 = vector.shape_cast %10 : vector<1x1x32x120xf32> to vector<32x120xf32>
    %cst_17 = arith.constant dense<0.000000e+00> : vector<30x120xf32>
    %12 = tpu.matmul %9, %11, %cst_17 {dimension_numbers = #tpu.dot_dimension_numbers<[1], [0], [0], [1], [0, 0, 1, 1], [], []>} : vector<30x32xf32>, vector<32x120xf32>, vector<30x120xf32> -> vector<30x120xf32>
    %13 = arith.addf %4, %12 : vector<30x120xf32>
    %c1_18 = arith.constant 1 : index
    %c1_19 = arith.constant 1 : index
    %c0_20 = arith.constant 0 : index
    %c0_21 = arith.constant 0 : index
    %14 = vector.load %arg2[%c1_18, %c1_19, %c0_20, %c0_21] : memref<2x3x32x120xf32, #tpu.memory_space<vmem>>, vector<1x1x32x120xf32>
    %15 = vector.shape_cast %14 : vector<1x1x32x120xf32> to vector<32x120xf32>
    %cst_22 = arith.constant dense<0.000000e+00> : vector<30x120xf32>
    %16 = tpu.matmul %9, %15, %cst_22 {dimension_numbers = #tpu.dot_dimension_numbers<[1], [0], [0], [1], [0, 0, 1, 1], [], []>} : vector<30x32xf32>, vector<32x120xf32>, vector<30x120xf32> -> vector<30x120xf32>
    %17 = arith.addf %7, %16 : vector<30x120xf32>
    %c0_23 = arith.constant 0 : index
    %c2 = arith.constant 2 : index
    %c0_24 = arith.constant 0 : index
    %18 = vector.load %arg1[%c0_23, %c2, %c0_24] : memref<1x32x32xf32, #tpu.memory_space<vmem>>, vector<1x30x32xf32>
    %19 = vector.shape_cast %18 : vector<1x30x32xf32> to vector<30x32xf32>
    %c0_25 = arith.constant 0 : index
    %c2_26 = arith.constant 2 : index
    %c0_27 = arith.constant 0 : index
    %c0_28 = arith.constant 0 : index
    %20 = vector.load %arg2[%c0_25, %c2_26, %c0_27, %c0_28] : memref<2x3x32x120xf32, #tpu.memory_space<vmem>>, vector<1x1x32x120xf32>
    %21 = vector.shape_cast %20 : vector<1x1x32x120xf32> to vector<32x120xf32>
    %cst_29 = arith.constant dense<0.000000e+00> : vector<30x120xf32>
    %22 = tpu.matmul %19, %21, %cst_29 {dimension_numbers = #tpu.dot_dimension_numbers<[1], [0], [0], [1], [0, 0, 1, 1], [], []>} : vector<30x32xf32>, vector<32x120xf32>, vector<30x120xf32> -> vector<30x120xf32>
    %23 = arith.addf %13, %22 : vector<30x120xf32>
    %c1_30 = arith.constant 1 : index
    %c2_31 = arith.constant 2 : index
    %c0_32 = arith.constant 0 : index
    %c0_33 = arith.constant 0 : index
    %24 = vector.load %arg2[%c1_30, %c2_31, %c0_32, %c0_33] : memref<2x3x32x120xf32, #tpu.memory_space<vmem>>, vector<1x1x32x120xf32>
    %25 = vector.shape_cast %24 : vector<1x1x32x120xf32> to vector<32x120xf32>
    %cst_34 = arith.constant dense<0.000000e+00> : vector<30x120xf32>
    %26 = tpu.matmul %19, %25, %cst_34 {dimension_numbers = #tpu.dot_dimension_numbers<[1], [0], [0], [1], [0, 0, 1, 1], [], []>} : vector<30x32xf32>, vector<32x120xf32>, vector<30x120xf32> -> vector<30x120xf32>
    %27 = arith.addf %17, %26 : vector<30x120xf32>
    %28 = arith.maximumf %23, %27 : vector<30x120xf32>
    %c0_35 = arith.constant 0 : index
    %c0_36 = arith.constant 0 : index
    %29 = vector.load %arg3[%c0_35, %c0_36] : memref<1x120xf32, #tpu.memory_space<vmem>>, vector<1x120xf32>
    %30 = vector.broadcast %29 : vector<1x120xf32> to vector<30x120xf32>
    %31 = arith.addf %28, %30 : vector<30x120xf32>
    %32 = vector.extract_strided_slice %31 {offsets = [0, 0], sizes = [1, 120], strides = [1, 1]} : vector<30x120xf32> to vector<1x120xf32>
    %33 = vector.extract_strided_slice %31 {offsets = [1, 0], sizes = [1, 120], strides = [1, 1]} : vector<30x120xf32> to vector<1x120xf32>
    %34 = arith.maximumf %32, %33 : vector<1x120xf32>
    %cst_37 = arith.constant 0.000000e+00 : f32
    %35 = vector.broadcast %cst_37 : f32 to vector<1x120xf32>
    %36 = arith.maximumf %34, %35 : vector<1x120xf32>
    %c0_38 = arith.constant 0 : index
    %c0_39 = arith.constant 0 : index
    %37 = vector.load %arg11[%c0_38, %c0_39] : memref<15x120xf32, #tpu.memory_space<vmem>>, vector<1x120xf32>
    tpu.vector_store %arg11[%c0_38, %c0_39], %36 {strides = array<i32>} : memref<15x120xf32, #tpu.memory_space<vmem>>, vector<1x120xf32>,
    %38 = vector.extract_strided_slice %31 {offsets = [2, 0], sizes = [1, 120], strides = [1, 1]} : vector<30x120xf32> to vector<1x120xf32>
    %39 = vector.extract_strided_slice %31 {offsets = [3, 0], sizes = [1, 120], strides = [1, 1]} : vector<30x120xf32> to vector<1x120xf32>
    %40 = arith.maximumf %38, %39 : vector<1x120xf32>
    %cst_40 = arith.constant 0.000000e+00 : f32
    %41 = vector.broadcast %cst_40 : f32 to vector<1x120xf32>
    %42 = arith.maximumf %40, %41 : vector<1x120xf32>
    %c1_41 = arith.constant 1 : index
    %c0_42 = arith.constant 0 : index
    %43 = vector.load %arg11[%c1_41, %c0_42] : memref<15x120xf32, #tpu.memory_space<vmem>>, vector<1x120xf32>
    tpu.vector_store %arg11[%c1_41, %c0_42], %42 {strides = array<i32>} : memref<15x120xf32, #tpu.memory_space<vmem>>, vector<1x120xf32>,
    %44 = vector.extract_strided_slice %31 {offsets = [4, 0], sizes = [1, 120], strides = [1, 1]} : vector<30x120xf32> to vector<1x120xf32>
    %45 = vector.extract_strided_slice %31 {offsets = [5, 0], sizes = [1, 120], strides = [1, 1]} : vector<30x120xf32> to vector<1x120xf32>
    %46 = arith.maximumf %44, %45 : vector<1x120xf32>
    %cst_43 = arith.constant 0.000000e+00 : f32
    %47 = vector.broadcast %cst_43 : f32 to vector<1x120xf32>
    %48 = arith.maximumf %46, %47 : vector<1x120xf32>
    %c2_44 = arith.constant 2 : index
    %c0_45 = arith.constant 0 : index
    %49 = vector.load %arg11[%c2_44, %c0_45] : memref<15x120xf32, #tpu.memory_space<vmem>>, vector<1x120xf32>
    tpu.vector_store %arg11[%c2_44, %c0_45], %48 {strides = array<i32>} : memref<15x120xf32, #tpu.memory_space<vmem>>, vector<1x120xf32>,
    %50 = vector.extract_strided_slice %31 {offsets = [6, 0], sizes = [1, 120], strides = [1, 1]} : vector<30x120xf32> to vector<1x120xf32>
    %51 = vector.extract_strided_slice %31 {offsets = [7, 0], sizes = [1, 120], strides = [1, 1]} : vector<30x120xf32> to vector<1x120xf32>
    %52 = arith.maximumf %50, %51 : vector<1x120xf32>
    %cst_46 = arith.constant 0.000000e+00 : f32
    %53 = vector.broadcast %cst_46 : f32 to vector<1x120xf32>
    %54 = arith.maximumf %52, %53 : vector<1x120xf32>
    %c3 = arith.constant 3 : index
    %c0_47 = arith.constant 0 : index
    %55 = vector.load %arg11[%c3, %c0_47] : memref<15x120xf32, #tpu.memory_space<vmem>>, vector<1x120xf32>
    tpu.vector_store %arg11[%c3, %c0_47], %54 {strides = array<i32>} : memref<15x120xf32, #tpu.memory_space<vmem>>, vector<1x120xf32>,
    %56 = vector.extract_strided_slice %31 {offsets = [8, 0], sizes = [1, 120], strides = [1, 1]} : vector<30x120xf32> to vector<1x120xf32>
    %57 = vector.extract_strided_slice %31 {offsets = [9, 0], sizes = [1, 120], strides = [1, 1]} : vector<30x120xf32> to vector<1x120xf32>
    %58 = arith.maximumf %56, %57 : vector<1x120xf32>
    %cst_48 = arith.constant 0.000000e+00 : f32
    %59 = vector.broadcast %cst_48 : f32 to vector<1x120xf32>
    %60 = arith.maximumf %58, %59 : vector<1x120xf32>
    %c4 = arith.constant 4 : index
    %c0_49 = arith.constant 0 : index
    %61 = vector.load %arg11[%c4, %c0_49] : memref<15x120xf32, #tpu.memory_space<vmem>>, vector<1x120xf32>
    tpu.vector_store %arg11[%c4, %c0_49], %60 {strides = array<i32>} : memref<15x120xf32, #tpu.memory_space<vmem>>, vector<1x120xf32>,
    %62 = vector.extract_strided_slice %31 {offsets = [10, 0], sizes = [1, 120], strides = [1, 1]} : vector<30x120xf32> to vector<1x120xf32>
    %63 = vector.extract_strided_slice %31 {offsets = [11, 0], sizes = [1, 120], strides = [1, 1]} : vector<30x120xf32> to vector<1x120xf32>
    %64 = arith.maximumf %62, %63 : vector<1x120xf32>
    %cst_50 = arith.constant 0.000000e+00 : f32
    %65 = vector.broadcast %cst_50 : f32 to vector<1x120xf32>
    %66 = arith.maximumf %64, %65 : vector<1x120xf32>
    %c5 = arith.constant 5 : index
    %c0_51 = arith.constant 0 : index
    %67 = vector.load %arg11[%c5, %c0_51] : memref<15x120xf32, #tpu.memory_space<vmem>>, vector<1x120xf32>
    tpu.vector_store %arg11[%c5, %c0_51], %66 {strides = array<i32>} : memref<15x120xf32, #tpu.memory_space<vmem>>, vector<1x120xf32>,
    %68 = vector.extract_strided_slice %31 {offsets = [12, 0], sizes = [1, 120], strides = [1, 1]} : vector<30x120xf32> to vector<1x120xf32>
    %69 = vector.extract_strided_slice %31 {offsets = [13, 0], sizes = [1, 120], strides = [1, 1]} : vector<30x120xf32> to vector<1x120xf32>
    %70 = arith.maximumf %68, %69 : vector<1x120xf32>
    %cst_52 = arith.constant 0.000000e+00 : f32
    %71 = vector.broadcast %cst_52 : f32 to vector<1x120xf32>
    %72 = arith.maximumf %70, %71 : vector<1x120xf32>
    %c6 = arith.constant 6 : index
    %c0_53 = arith.constant 0 : index
    %73 = vector.load %arg11[%c6, %c0_53] : memref<15x120xf32, #tpu.memory_space<vmem>>, vector<1x120xf32>
    tpu.vector_store %arg11[%c6, %c0_53], %72 {strides = array<i32>} : memref<15x120xf32, #tpu.memory_space<vmem>>, vector<1x120xf32>,
    %74 = vector.extract_strided_slice %31 {offsets = [14, 0], sizes = [1, 120], strides = [1, 1]} : vector<30x120xf32> to vector<1x120xf32>
    %75 = vector.extract_strided_slice %31 {offsets = [15, 0], sizes = [1, 120], strides = [1, 1]} : vector<30x120xf32> to vector<1x120xf32>
    %76 = arith.maximumf %74, %75 : vector<1x120xf32>
    %cst_54 = arith.constant 0.000000e+00 : f32
    %77 = vector.broadcast %cst_54 : f32 to vector<1x120xf32>
    %78 = arith.maximumf %76, %77 : vector<1x120xf32>
    %c7 = arith.constant 7 : index
    %c0_55 = arith.constant 0 : index
    %79 = vector.load %arg11[%c7, %c0_55] : memref<15x120xf32, #tpu.memory_space<vmem>>, vector<1x120xf32>
    tpu.vector_store %arg11[%c7, %c0_55], %78 {strides = array<i32>} : memref<15x120xf32, #tpu.memory_space<vmem>>, vector<1x120xf32>,
    %80 = vector.extract_strided_slice %31 {offsets = [16, 0], sizes = [1, 120], strides = [1, 1]} : vector<30x120xf32> to vector<1x120xf32>
    %81 = vector.extract_strided_slice %31 {offsets = [17, 0], sizes = [1, 120], strides = [1, 1]} : vector<30x120xf32> to vector<1x120xf32>
    %82 = arith.maximumf %80, %81 : vector<1x120xf32>
    %cst_56 = arith.constant 0.000000e+00 : f32
    %83 = vector.broadcast %cst_56 : f32 to vector<1x120xf32>
    %84 = arith.maximumf %82, %83 : vector<1x120xf32>
    %c8 = arith.constant 8 : index
    %c0_57 = arith.constant 0 : index
    %85 = vector.load %arg11[%c8, %c0_57] : memref<15x120xf32, #tpu.memory_space<vmem>>, vector<1x120xf32>
    tpu.vector_store %arg11[%c8, %c0_57], %84 {strides = array<i32>} : memref<15x120xf32, #tpu.memory_space<vmem>>, vector<1x120xf32>,
    %86 = vector.extract_strided_slice %31 {offsets = [18, 0], sizes = [1, 120], strides = [1, 1]} : vector<30x120xf32> to vector<1x120xf32>
    %87 = vector.extract_strided_slice %31 {offsets = [19, 0], sizes = [1, 120], strides = [1, 1]} : vector<30x120xf32> to vector<1x120xf32>
    %88 = arith.maximumf %86, %87 : vector<1x120xf32>
    %cst_58 = arith.constant 0.000000e+00 : f32
    %89 = vector.broadcast %cst_58 : f32 to vector<1x120xf32>
    %90 = arith.maximumf %88, %89 : vector<1x120xf32>
    %c9 = arith.constant 9 : index
    %c0_59 = arith.constant 0 : index
    %91 = vector.load %arg11[%c9, %c0_59] : memref<15x120xf32, #tpu.memory_space<vmem>>, vector<1x120xf32>
    tpu.vector_store %arg11[%c9, %c0_59], %90 {strides = array<i32>} : memref<15x120xf32, #tpu.memory_space<vmem>>, vector<1x120xf32>,
    %92 = vector.extract_strided_slice %31 {offsets = [20, 0], sizes = [1, 120], strides = [1, 1]} : vector<30x120xf32> to vector<1x120xf32>
    %93 = vector.extract_strided_slice %31 {offsets = [21, 0], sizes = [1, 120], strides = [1, 1]} : vector<30x120xf32> to vector<1x120xf32>
    %94 = arith.maximumf %92, %93 : vector<1x120xf32>
    %cst_60 = arith.constant 0.000000e+00 : f32
    %95 = vector.broadcast %cst_60 : f32 to vector<1x120xf32>
    %96 = arith.maximumf %94, %95 : vector<1x120xf32>
    %c10 = arith.constant 10 : index
    %c0_61 = arith.constant 0 : index
    %97 = vector.load %arg11[%c10, %c0_61] : memref<15x120xf32, #tpu.memory_space<vmem>>, vector<1x120xf32>
    tpu.vector_store %arg11[%c10, %c0_61], %96 {strides = array<i32>} : memref<15x120xf32, #tpu.memory_space<vmem>>, vector<1x120xf32>,
    %98 = vector.extract_strided_slice %31 {offsets = [22, 0], sizes = [1, 120], strides = [1, 1]} : vector<30x120xf32> to vector<1x120xf32>
    %99 = vector.extract_strided_slice %31 {offsets = [23, 0], sizes = [1, 120], strides = [1, 1]} : vector<30x120xf32> to vector<1x120xf32>
    %100 = arith.maximumf %98, %99 : vector<1x120xf32>
    %cst_62 = arith.constant 0.000000e+00 : f32
    %101 = vector.broadcast %cst_62 : f32 to vector<1x120xf32>
    %102 = arith.maximumf %100, %101 : vector<1x120xf32>
    %c11 = arith.constant 11 : index
    %c0_63 = arith.constant 0 : index
    %103 = vector.load %arg11[%c11, %c0_63] : memref<15x120xf32, #tpu.memory_space<vmem>>, vector<1x120xf32>
    tpu.vector_store %arg11[%c11, %c0_63], %102 {strides = array<i32>} : memref<15x120xf32, #tpu.memory_space<vmem>>, vector<1x120xf32>,
    %104 = vector.extract_strided_slice %31 {offsets = [24, 0], sizes = [1, 120], strides = [1, 1]} : vector<30x120xf32> to vector<1x120xf32>
    %105 = vector.extract_strided_slice %31 {offsets = [25, 0], sizes = [1, 120], strides = [1, 1]} : vector<30x120xf32> to vector<1x120xf32>
    %106 = arith.maximumf %104, %105 : vector<1x120xf32>
    %cst_64 = arith.constant 0.000000e+00 : f32
    %107 = vector.broadcast %cst_64 : f32 to vector<1x120xf32>
    %108 = arith.maximumf %106, %107 : vector<1x120xf32>
    %c12 = arith.constant 12 : index
    %c0_65 = arith.constant 0 : index
    %109 = vector.load %arg11[%c12, %c0_65] : memref<15x120xf32, #tpu.memory_space<vmem>>, vector<1x120xf32>
    tpu.vector_store %arg11[%c12, %c0_65], %108 {strides = array<i32>} : memref<15x120xf32, #tpu.memory_space<vmem>>, vector<1x120xf32>,
    %110 = vector.extract_strided_slice %31 {offsets = [26, 0], sizes = [1, 120], strides = [1, 1]} : vector<30x120xf32> to vector<1x120xf32>
    %111 = vector.extract_strided_slice %31 {offsets = [27, 0], sizes = [1, 120], strides = [1, 1]} : vector<30x120xf32> to vector<1x120xf32>
    %112 = arith.maximumf %110, %111 : vector<1x120xf32>
    %cst_66 = arith.constant 0.000000e+00 : f32
    %113 = vector.broadcast %cst_66 : f32 to vector<1x120xf32>
    %114 = arith.maximumf %112, %113 : vector<1x120xf32>
    %c13 = arith.constant 13 : index
    %c0_67 = arith.constant 0 : index
    %115 = vector.load %arg11[%c13, %c0_67] : memref<15x120xf32, #tpu.memory_space<vmem>>, vector<1x120xf32>
    tpu.vector_store %arg11[%c13, %c0_67], %114 {strides = array<i32>} : memref<15x120xf32, #tpu.memory_space<vmem>>, vector<1x120xf32>,
    %116 = vector.extract_strided_slice %31 {offsets = [28, 0], sizes = [1, 120], strides = [1, 1]} : vector<30x120xf32> to vector<1x120xf32>
    %117 = vector.extract_strided_slice %31 {offsets = [29, 0], sizes = [1, 120], strides = [1, 1]} : vector<30x120xf32> to vector<1x120xf32>
    %118 = arith.maximumf %116, %117 : vector<1x120xf32>
    %cst_68 = arith.constant 0.000000e+00 : f32
    %119 = vector.broadcast %cst_68 : f32 to vector<1x120xf32>
    %120 = arith.maximumf %118, %119 : vector<1x120xf32>
    %c14 = arith.constant 14 : index
    %c0_69 = arith.constant 0 : index
    %121 = vector.load %arg11[%c14, %c0_69] : memref<15x120xf32, #tpu.memory_space<vmem>>, vector<1x120xf32>
    tpu.vector_store %arg11[%c14, %c0_69], %120 {strides = array<i32>} : memref<15x120xf32, #tpu.memory_space<vmem>>, vector<1x120xf32>,
    %c0_70 = arith.constant 0 : index
    %c0_71 = arith.constant 0 : index
    %122 = vector.load %arg11[%c0_70, %c0_71] : memref<15x120xf32, #tpu.memory_space<vmem>>, vector<12x120xf32>
    %c0_72 = arith.constant 0 : index
    %c0_73 = arith.constant 0 : index
    %c0_74 = arith.constant 0 : index
    %c0_75 = arith.constant 0 : index
    %123 = vector.load %arg4[%c0_72, %c0_73, %c0_74, %c0_75] : memref<2x3x120x96xf32, #tpu.memory_space<vmem>>, vector<1x1x120x96xf32>
    %124 = vector.shape_cast %123 : vector<1x1x120x96xf32> to vector<120x96xf32>
    %cst_76 = arith.constant dense<0.000000e+00> : vector<12x96xf32>
    %125 = tpu.matmul %122, %124, %cst_76 {dimension_numbers = #tpu.dot_dimension_numbers<[1], [0], [0], [1], [0, 0, 1, 1], [], []>} : vector<12x120xf32>, vector<120x96xf32>, vector<12x96xf32> -> vector<12x96xf32>
    %c1_77 = arith.constant 1 : index
    %c0_78 = arith.constant 0 : index
    %c0_79 = arith.constant 0 : index
    %c0_80 = arith.constant 0 : index
    %126 = vector.load %arg4[%c1_77, %c0_78, %c0_79, %c0_80] : memref<2x3x120x96xf32, #tpu.memory_space<vmem>>, vector<1x1x120x96xf32>
    %127 = vector.shape_cast %126 : vector<1x1x120x96xf32> to vector<120x96xf32>
    %cst_81 = arith.constant dense<0.000000e+00> : vector<12x96xf32>
    %128 = tpu.matmul %122, %127, %cst_81 {dimension_numbers = #tpu.dot_dimension_numbers<[1], [0], [0], [1], [0, 0, 1, 1], [], []>} : vector<12x120xf32>, vector<120x96xf32>, vector<12x96xf32> -> vector<12x96xf32>
    %c1_82 = arith.constant 1 : index
    %c0_83 = arith.constant 0 : index
    %129 = vector.load %arg11[%c1_82, %c0_83] : memref<15x120xf32, #tpu.memory_space<vmem>>, vector<12x120xf32>
    %c0_84 = arith.constant 0 : index
    %c1_85 = arith.constant 1 : index
    %c0_86 = arith.constant 0 : index
    %c0_87 = arith.constant 0 : index
    %130 = vector.load %arg4[%c0_84, %c1_85, %c0_86, %c0_87] : memref<2x3x120x96xf32, #tpu.memory_space<vmem>>, vector<1x1x120x96xf32>
    %131 = vector.shape_cast %130 : vector<1x1x120x96xf32> to vector<120x96xf32>
    %cst_88 = arith.constant dense<0.000000e+00> : vector<12x96xf32>
    %132 = tpu.matmul %129, %131, %cst_88 {dimension_numbers = #tpu.dot_dimension_numbers<[1], [0], [0], [1], [0, 0, 1, 1], [], []>} : vector<12x120xf32>, vector<120x96xf32>, vector<12x96xf32> -> vector<12x96xf32>
    %133 = arith.addf %125, %132 : vector<12x96xf32>
    %c1_89 = arith.constant 1 : index
    %c1_90 = arith.constant 1 : index
    %c0_91 = arith.constant 0 : index
    %c0_92 = arith.constant 0 : index
    %134 = vector.load %arg4[%c1_89, %c1_90, %c0_91, %c0_92] : memref<2x3x120x96xf32, #tpu.memory_space<vmem>>, vector<1x1x120x96xf32>
    %135 = vector.shape_cast %134 : vector<1x1x120x96xf32> to vector<120x96xf32>
    %cst_93 = arith.constant dense<0.000000e+00> : vector<12x96xf32>
    %136 = tpu.matmul %129, %135, %cst_93 {dimension_numbers = #tpu.dot_dimension_numbers<[1], [0], [0], [1], [0, 0, 1, 1], [], []>} : vector<12x120xf32>, vector<120x96xf32>, vector<12x96xf32> -> vector<12x96xf32>
    %137 = arith.addf %128, %136 : vector<12x96xf32>
    %c2_94 = arith.constant 2 : index
    %c0_95 = arith.constant 0 : index
    %138 = vector.load %arg11[%c2_94, %c0_95] : memref<15x120xf32, #tpu.memory_space<vmem>>, vector<12x120xf32>
    %c0_96 = arith.constant 0 : index
    %c2_97 = arith.constant 2 : index
    %c0_98 = arith.constant 0 : index
    %c0_99 = arith.constant 0 : index
    %139 = vector.load %arg4[%c0_96, %c2_97, %c0_98, %c0_99] : memref<2x3x120x96xf32, #tpu.memory_space<vmem>>, vector<1x1x120x96xf32>
    %140 = vector.shape_cast %139 : vector<1x1x120x96xf32> to vector<120x96xf32>
    %cst_100 = arith.constant dense<0.000000e+00> : vector<12x96xf32>
    %141 = tpu.matmul %138, %140, %cst_100 {dimension_numbers = #tpu.dot_dimension_numbers<[1], [0], [0], [1], [0, 0, 1, 1], [], []>} : vector<12x120xf32>, vector<120x96xf32>, vector<12x96xf32> -> vector<12x96xf32>
    %142 = arith.addf %133, %141 : vector<12x96xf32>
    %c1_101 = arith.constant 1 : index
    %c2_102 = arith.constant 2 : index
    %c0_103 = arith.constant 0 : index
    %c0_104 = arith.constant 0 : index
    %143 = vector.load %arg4[%c1_101, %c2_102, %c0_103, %c0_104] : memref<2x3x120x96xf32, #tpu.memory_space<vmem>>, vector<1x1x120x96xf32>
    %144 = vector.shape_cast %143 : vector<1x1x120x96xf32> to vector<120x96xf32>
    %cst_105 = arith.constant dense<0.000000e+00> : vector<12x96xf32>
    %145 = tpu.matmul %138, %144, %cst_105 {dimension_numbers = #tpu.dot_dimension_numbers<[1], [0], [0], [1], [0, 0, 1, 1], [], []>} : vector<12x120xf32>, vector<120x96xf32>, vector<12x96xf32> -> vector<12x96xf32>
    %146 = arith.addf %137, %145 : vector<12x96xf32>
    %147 = arith.maximumf %142, %146 : vector<12x96xf32>
    %c0_106 = arith.constant 0 : index
    %c0_107 = arith.constant 0 : index
    %148 = vector.load %arg5[%c0_106, %c0_107] : memref<1x96xf32, #tpu.memory_space<vmem>>, vector<1x96xf32>
    %149 = vector.broadcast %148 : vector<1x96xf32> to vector<12x96xf32>
    %150 = arith.addf %147, %149 : vector<12x96xf32>
    %151 = vector.extract_strided_slice %150 {offsets = [0, 0], sizes = [1, 96], strides = [1, 1]} : vector<12x96xf32> to vector<1x96xf32>
    %152 = vector.extract_strided_slice %150 {offsets = [1, 0], sizes = [1, 96], strides = [1, 1]} : vector<12x96xf32> to vector<1x96xf32>
    %153 = arith.maximumf %151, %152 : vector<1x96xf32>
    %cst_108 = arith.constant 0.000000e+00 : f32
    %154 = vector.broadcast %cst_108 : f32 to vector<1x96xf32>
    %155 = arith.maximumf %153, %154 : vector<1x96xf32>
    %c0_109 = arith.constant 0 : index
    %c0_110 = arith.constant 0 : index
    %156 = vector.load %arg12[%c0_109, %c0_110] : memref<6x96xf32, #tpu.memory_space<vmem>>, vector<1x96xf32>
    tpu.vector_store %arg12[%c0_109, %c0_110], %155 {strides = array<i32>} : memref<6x96xf32, #tpu.memory_space<vmem>>, vector<1x96xf32>,
    %157 = vector.extract_strided_slice %150 {offsets = [2, 0], sizes = [1, 96], strides = [1, 1]} : vector<12x96xf32> to vector<1x96xf32>
    %158 = vector.extract_strided_slice %150 {offsets = [3, 0], sizes = [1, 96], strides = [1, 1]} : vector<12x96xf32> to vector<1x96xf32>
    %159 = arith.maximumf %157, %158 : vector<1x96xf32>
    %cst_111 = arith.constant 0.000000e+00 : f32
    %160 = vector.broadcast %cst_111 : f32 to vector<1x96xf32>
    %161 = arith.maximumf %159, %160 : vector<1x96xf32>
    %c1_112 = arith.constant 1 : index
    %c0_113 = arith.constant 0 : index
    %162 = vector.load %arg12[%c1_112, %c0_113] : memref<6x96xf32, #tpu.memory_space<vmem>>, vector<1x96xf32>
    tpu.vector_store %arg12[%c1_112, %c0_113], %161 {strides = array<i32>} : memref<6x96xf32, #tpu.memory_space<vmem>>, vector<1x96xf32>,
    %163 = vector.extract_strided_slice %150 {offsets = [4, 0], sizes = [1, 96], strides = [1, 1]} : vector<12x96xf32> to vector<1x96xf32>
    %164 = vector.extract_strided_slice %150 {offsets = [5, 0], sizes = [1, 96], strides = [1, 1]} : vector<12x96xf32> to vector<1x96xf32>
    %165 = arith.maximumf %163, %164 : vector<1x96xf32>
    %cst_114 = arith.constant 0.000000e+00 : f32
    %166 = vector.broadcast %cst_114 : f32 to vector<1x96xf32>
    %167 = arith.maximumf %165, %166 : vector<1x96xf32>
    %c2_115 = arith.constant 2 : index
    %c0_116 = arith.constant 0 : index
    %168 = vector.load %arg12[%c2_115, %c0_116] : memref<6x96xf32, #tpu.memory_space<vmem>>, vector<1x96xf32>
    tpu.vector_store %arg12[%c2_115, %c0_116], %167 {strides = array<i32>} : memref<6x96xf32, #tpu.memory_space<vmem>>, vector<1x96xf32>,
    %169 = vector.extract_strided_slice %150 {offsets = [6, 0], sizes = [1, 96], strides = [1, 1]} : vector<12x96xf32> to vector<1x96xf32>
    %170 = vector.extract_strided_slice %150 {offsets = [7, 0], sizes = [1, 96], strides = [1, 1]} : vector<12x96xf32> to vector<1x96xf32>
    %171 = arith.maximumf %169, %170 : vector<1x96xf32>
    %cst_117 = arith.constant 0.000000e+00 : f32
    %172 = vector.broadcast %cst_117 : f32 to vector<1x96xf32>
    %173 = arith.maximumf %171, %172 : vector<1x96xf32>
    %c3_118 = arith.constant 3 : index
    %c0_119 = arith.constant 0 : index
    %174 = vector.load %arg12[%c3_118, %c0_119] : memref<6x96xf32, #tpu.memory_space<vmem>>, vector<1x96xf32>
    tpu.vector_store %arg12[%c3_118, %c0_119], %173 {strides = array<i32>} : memref<6x96xf32, #tpu.memory_space<vmem>>, vector<1x96xf32>,
    %175 = vector.extract_strided_slice %150 {offsets = [8, 0], sizes = [1, 96], strides = [1, 1]} : vector<12x96xf32> to vector<1x96xf32>
    %176 = vector.extract_strided_slice %150 {offsets = [9, 0], sizes = [1, 96], strides = [1, 1]} : vector<12x96xf32> to vector<1x96xf32>
    %177 = arith.maximumf %175, %176 : vector<1x96xf32>
    %cst_120 = arith.constant 0.000000e+00 : f32
    %178 = vector.broadcast %cst_120 : f32 to vector<1x96xf32>
    %179 = arith.maximumf %177, %178 : vector<1x96xf32>
    %c4_121 = arith.constant 4 : index
    %c0_122 = arith.constant 0 : index
    %180 = vector.load %arg12[%c4_121, %c0_122] : memref<6x96xf32, #tpu.memory_space<vmem>>, vector<1x96xf32>
    tpu.vector_store %arg12[%c4_121, %c0_122], %179 {strides = array<i32>} : memref<6x96xf32, #tpu.memory_space<vmem>>, vector<1x96xf32>,
    %181 = vector.extract_strided_slice %150 {offsets = [10, 0], sizes = [1, 96], strides = [1, 1]} : vector<12x96xf32> to vector<1x96xf32>
    %182 = vector.extract_strided_slice %150 {offsets = [11, 0], sizes = [1, 96], strides = [1, 1]} : vector<12x96xf32> to vector<1x96xf32>
    %183 = arith.maximumf %181, %182 : vector<1x96xf32>
    %cst_123 = arith.constant 0.000000e+00 : f32
    %184 = vector.broadcast %cst_123 : f32 to vector<1x96xf32>
    %185 = arith.maximumf %183, %184 : vector<1x96xf32>
    %c5_124 = arith.constant 5 : index
    %c0_125 = arith.constant 0 : index
    %186 = vector.load %arg12[%c5_124, %c0_125] : memref<6x96xf32, #tpu.memory_space<vmem>>, vector<1x96xf32>
    tpu.vector_store %arg12[%c5_124, %c0_125], %185 {strides = array<i32>} : memref<6x96xf32, #tpu.memory_space<vmem>>, vector<1x96xf32>,
    %c0_126 = arith.constant 0 : index
    %c0_127 = arith.constant 0 : index
    %187 = vector.load %arg12[%c0_126, %c0_127] : memref<6x96xf32, #tpu.memory_space<vmem>>, vector<4x96xf32>
    %c0_128 = arith.constant 0 : index
    %c0_129 = arith.constant 0 : index
    %c0_130 = arith.constant 0 : index
    %c0_131 = arith.constant 0 : index
    %188 = vector.load %arg6[%c0_128, %c0_129, %c0_130, %c0_131] : memref<2x3x96x64xf32, #tpu.memory_space<vmem>>, vector<1x1x96x64xf32>
    %189 = vector.shape_cast %188 : vector<1x1x96x64xf32> to vector<96x64xf32>
    %cst_132 = arith.constant dense<0.000000e+00> : vector<4x64xf32>
    %190 = tpu.matmul %187, %189, %cst_132 {dimension_numbers = #tpu.dot_dimension_numbers<[1], [0], [0], [1], [0, 0, 1, 1], [], []>} : vector<4x96xf32>, vector<96x64xf32>, vector<4x64xf32> -> vector<4x64xf32>
    %c1_133 = arith.constant 1 : index
    %c0_134 = arith.constant 0 : index
    %c0_135 = arith.constant 0 : index
    %c0_136 = arith.constant 0 : index
    %191 = vector.load %arg6[%c1_133, %c0_134, %c0_135, %c0_136] : memref<2x3x96x64xf32, #tpu.memory_space<vmem>>, vector<1x1x96x64xf32>
    %192 = vector.shape_cast %191 : vector<1x1x96x64xf32> to vector<96x64xf32>
    %cst_137 = arith.constant dense<0.000000e+00> : vector<4x64xf32>
    %193 = tpu.matmul %187, %192, %cst_137 {dimension_numbers = #tpu.dot_dimension_numbers<[1], [0], [0], [1], [0, 0, 1, 1], [], []>} : vector<4x96xf32>, vector<96x64xf32>, vector<4x64xf32> -> vector<4x64xf32>
    %c1_138 = arith.constant 1 : index
    %c0_139 = arith.constant 0 : index
    %194 = vector.load %arg12[%c1_138, %c0_139] : memref<6x96xf32, #tpu.memory_space<vmem>>, vector<4x96xf32>
    %c0_140 = arith.constant 0 : index
    %c1_141 = arith.constant 1 : index
    %c0_142 = arith.constant 0 : index
    %c0_143 = arith.constant 0 : index
    %195 = vector.load %arg6[%c0_140, %c1_141, %c0_142, %c0_143] : memref<2x3x96x64xf32, #tpu.memory_space<vmem>>, vector<1x1x96x64xf32>
    %196 = vector.shape_cast %195 : vector<1x1x96x64xf32> to vector<96x64xf32>
    %cst_144 = arith.constant dense<0.000000e+00> : vector<4x64xf32>
    %197 = tpu.matmul %194, %196, %cst_144 {dimension_numbers = #tpu.dot_dimension_numbers<[1], [0], [0], [1], [0, 0, 1, 1], [], []>} : vector<4x96xf32>, vector<96x64xf32>, vector<4x64xf32> -> vector<4x64xf32>
    %198 = arith.addf %190, %197 : vector<4x64xf32>
    %c1_145 = arith.constant 1 : index
    %c1_146 = arith.constant 1 : index
    %c0_147 = arith.constant 0 : index
    %c0_148 = arith.constant 0 : index
    %199 = vector.load %arg6[%c1_145, %c1_146, %c0_147, %c0_148] : memref<2x3x96x64xf32, #tpu.memory_space<vmem>>, vector<1x1x96x64xf32>
    %200 = vector.shape_cast %199 : vector<1x1x96x64xf32> to vector<96x64xf32>
    %cst_149 = arith.constant dense<0.000000e+00> : vector<4x64xf32>
    %201 = tpu.matmul %194, %200, %cst_149 {dimension_numbers = #tpu.dot_dimension_numbers<[1], [0], [0], [1], [0, 0, 1, 1], [], []>} : vector<4x96xf32>, vector<96x64xf32>, vector<4x64xf32> -> vector<4x64xf32>
    %202 = arith.addf %193, %201 : vector<4x64xf32>
    %c2_150 = arith.constant 2 : index
    %c0_151 = arith.constant 0 : index
    %203 = vector.load %arg12[%c2_150, %c0_151] : memref<6x96xf32, #tpu.memory_space<vmem>>, vector<4x96xf32>
    %c0_152 = arith.constant 0 : index
    %c2_153 = arith.constant 2 : index
    %c0_154 = arith.constant 0 : index
    %c0_155 = arith.constant 0 : index
    %204 = vector.load %arg6[%c0_152, %c2_153, %c0_154, %c0_155] : memref<2x3x96x64xf32, #tpu.memory_space<vmem>>, vector<1x1x96x64xf32>
    %205 = vector.shape_cast %204 : vector<1x1x96x64xf32> to vector<96x64xf32>
    %cst_156 = arith.constant dense<0.000000e+00> : vector<4x64xf32>
    %206 = tpu.matmul %203, %205, %cst_156 {dimension_numbers = #tpu.dot_dimension_numbers<[1], [0], [0], [1], [0, 0, 1, 1], [], []>} : vector<4x96xf32>, vector<96x64xf32>, vector<4x64xf32> -> vector<4x64xf32>
    %207 = arith.addf %198, %206 : vector<4x64xf32>
    %c1_157 = arith.constant 1 : index
    %c2_158 = arith.constant 2 : index
    %c0_159 = arith.constant 0 : index
    %c0_160 = arith.constant 0 : index
    %208 = vector.load %arg6[%c1_157, %c2_158, %c0_159, %c0_160] : memref<2x3x96x64xf32, #tpu.memory_space<vmem>>, vector<1x1x96x64xf32>
    %209 = vector.shape_cast %208 : vector<1x1x96x64xf32> to vector<96x64xf32>
    %cst_161 = arith.constant dense<0.000000e+00> : vector<4x64xf32>
    %210 = tpu.matmul %203, %209, %cst_161 {dimension_numbers = #tpu.dot_dimension_numbers<[1], [0], [0], [1], [0, 0, 1, 1], [], []>} : vector<4x96xf32>, vector<96x64xf32>, vector<4x64xf32> -> vector<4x64xf32>
    %211 = arith.addf %202, %210 : vector<4x64xf32>
    %212 = arith.maximumf %207, %211 : vector<4x64xf32>
    %c0_162 = arith.constant 0 : index
    %c0_163 = arith.constant 0 : index
    %213 = vector.load %arg7[%c0_162, %c0_163] : memref<1x64xf32, #tpu.memory_space<vmem>>, vector<1x64xf32>
    %214 = vector.broadcast %213 : vector<1x64xf32> to vector<4x64xf32>
    %215 = arith.addf %212, %214 : vector<4x64xf32>
    %216 = vector.extract_strided_slice %215 {offsets = [0, 0], sizes = [1, 64], strides = [1, 1]} : vector<4x64xf32> to vector<1x64xf32>
    %217 = vector.extract_strided_slice %215 {offsets = [1, 0], sizes = [1, 64], strides = [1, 1]} : vector<4x64xf32> to vector<1x64xf32>
    %218 = arith.maximumf %216, %217 : vector<1x64xf32>
    %cst_164 = arith.constant 0.000000e+00 : f32
    %219 = vector.broadcast %cst_164 : f32 to vector<1x64xf32>
    %220 = arith.maximumf %218, %219 : vector<1x64xf32>
    %221 = vector.extract_strided_slice %215 {offsets = [2, 0], sizes = [1, 64], strides = [1, 1]} : vector<4x64xf32> to vector<1x64xf32>
    %222 = vector.extract_strided_slice %215 {offsets = [3, 0], sizes = [1, 64], strides = [1, 1]} : vector<4x64xf32> to vector<1x64xf32>
    %223 = arith.maximumf %221, %222 : vector<1x64xf32>
    %cst_165 = arith.constant 0.000000e+00 : f32
    %224 = vector.broadcast %cst_165 : f32 to vector<1x64xf32>
    %225 = arith.maximumf %223, %224 : vector<1x64xf32>
    %c0_166 = arith.constant 0 : index
    %c0_167 = arith.constant 0 : index
    %226 = vector.load %arg9[%c0_166, %c0_167] : memref<1x1xf32, #tpu.memory_space<vmem>>, vector<1x1xf32>
    %c0_168 = arith.constant 0 : index
    %c0_169 = arith.constant 0 : index
    %227 = vector.load %arg8[%c0_168, %c0_169] : memref<2x64xf32, #tpu.memory_space<vmem>>, vector<1x64xf32>
    %228 = arith.mulf %220, %227 : vector<1x64xf32>
    %cst_170 = arith.constant dense<0.000000e+00> : vector<1xf32>
    %229 = vector.multi_reduction <add>, %228, %cst_170 [1] : vector<1x64xf32> to vector<1xf32>
    %230 = vector.shape_cast %229 : vector<1xf32> to vector<1x1xf32>
    %231 = arith.addf %226, %230 : vector<1x1xf32>
    %c1_171 = arith.constant 1 : index
    %c0_172 = arith.constant 0 : index
    %232 = vector.load %arg8[%c1_171, %c0_172] : memref<2x64xf32, #tpu.memory_space<vmem>>, vector<1x64xf32>
    %233 = arith.mulf %225, %232 : vector<1x64xf32>
    %cst_173 = arith.constant dense<0.000000e+00> : vector<1xf32>
    %234 = vector.multi_reduction <add>, %233, %cst_173 [1] : vector<1x64xf32> to vector<1xf32>
    %235 = vector.shape_cast %234 : vector<1xf32> to vector<1x1xf32>
    %236 = arith.addf %231, %235 : vector<1x1xf32>
    %cst_174 = arith.constant 0.000000e+00 : f32
    %237 = vector.broadcast %cst_174 : f32 to vector<1x1xf32>
    %238 = arith.subf %237, %236 : vector<1x1xf32>
    %239 = math.exp %238 : vector<1x1xf32>
    %cst_175 = arith.constant 1.000000e+00 : f32
    %240 = vector.broadcast %cst_175 : f32 to vector<1x1xf32>
    %241 = arith.addf %240, %239 : vector<1x1xf32>
    %cst_176 = arith.constant 1.000000e+00 : f32
    %242 = vector.broadcast %cst_176 : f32 to vector<1x1xf32>
    %243 = arith.divf %242, %241 : vector<1x1xf32>
    %c0_177 = arith.constant 0 : index
    %c0_178 = arith.constant 0 : index
    %c0_179 = arith.constant 0 : index
    %244 = vector.load %arg10[%c0_177, %c0_178, %c0_179] : memref<1x1x1xf32, #tpu.memory_space<vmem>>, vector<1x1x1xf32>
    %245 = vector.shape_cast %244 : vector<1x1x1xf32> to vector<1x1xf32>
    %246 = vector.shape_cast %243 : vector<1x1xf32> to vector<1x1x1xf32>
    tpu.vector_store %arg10[%c0_177, %c0_178, %c0_179], %246 {strides = array<i32>} : memref<1x1x1xf32, #tpu.memory_space<vmem>>, vector<1x1x1xf32>,
    return
  }
  func.func @transform_0(%arg0: i32) -> (i32, i32, i32) {
    %c0_i32 = arith.constant 0 : i32
    %c0_i32_0 = arith.constant 0 : i32
    %c0_i32_1 = arith.constant 0 : i32
    return %arg0, %c0_i32, %c0_i32_0 : i32, i32, i32
  }
  func.func @transform_1(%arg0: i32) -> (i32, i32, i32, i32) {
    %c0_i32 = arith.constant 0 : i32
    %c0_i32_0 = arith.constant 0 : i32
    %c0_i32_1 = arith.constant 0 : i32
    %c0_i32_2 = arith.constant 0 : i32
    %c0_i32_3 = arith.constant 0 : i32
    return %c0_i32, %c0_i32_0, %c0_i32_1, %c0_i32_2 : i32, i32, i32, i32
  }
  func.func @transform_2(%arg0: i32) -> (i32, i32) {
    %c0_i32 = arith.constant 0 : i32
    %c0_i32_0 = arith.constant 0 : i32
    %c0_i32_1 = arith.constant 0 : i32
    return %c0_i32, %c0_i32_0 : i32, i32
  }
  func.func @transform_3(%arg0: i32) -> (i32, i32, i32, i32) {
    %c0_i32 = arith.constant 0 : i32
    %c0_i32_0 = arith.constant 0 : i32
    %c0_i32_1 = arith.constant 0 : i32
    %c0_i32_2 = arith.constant 0 : i32
    %c0_i32_3 = arith.constant 0 : i32
    return %c0_i32, %c0_i32_0, %c0_i32_1, %c0_i32_2 : i32, i32, i32, i32
  }
  func.func @transform_4(%arg0: i32) -> (i32, i32) {
    %c0_i32 = arith.constant 0 : i32
    %c0_i32_0 = arith.constant 0 : i32
    %c0_i32_1 = arith.constant 0 : i32
    return %c0_i32, %c0_i32_0 : i32, i32
  }
  func.func @transform_5(%arg0: i32) -> (i32, i32, i32, i32) {
    %c0_i32 = arith.constant 0 : i32
    %c0_i32_0 = arith.constant 0 : i32
    %c0_i32_1 = arith.constant 0 : i32
    %c0_i32_2 = arith.constant 0 : i32
    %c0_i32_3 = arith.constant 0 : i32
    return %c0_i32, %c0_i32_0, %c0_i32_1, %c0_i32_2 : i32, i32, i32, i32
  }
  func.func @transform_6(%arg0: i32) -> (i32, i32) {
    %c0_i32 = arith.constant 0 : i32
    %c0_i32_0 = arith.constant 0 : i32
    %c0_i32_1 = arith.constant 0 : i32
    return %c0_i32, %c0_i32_0 : i32, i32
  }
  func.func @transform_7(%arg0: i32) -> (i32, i32) {
    %c0_i32 = arith.constant 0 : i32
    %c0_i32_0 = arith.constant 0 : i32
    %c0_i32_1 = arith.constant 0 : i32
    return %c0_i32, %c0_i32_0 : i32, i32
  }
  func.func @transform_8(%arg0: i32) -> (i32, i32) {
    %c0_i32 = arith.constant 0 : i32
    %c0_i32_0 = arith.constant 0 : i32
    %c0_i32_1 = arith.constant 0 : i32
    return %c0_i32, %c0_i32_0 : i32, i32
  }
  func.func @transform_9(%arg0: i32) -> (i32, i32, i32) {
    %c0_i32 = arith.constant 0 : i32
    %c0_i32_0 = arith.constant 0 : i32
    %c0_i32_1 = arith.constant 0 : i32
    return %arg0, %c0_i32, %c0_i32_0 : i32, i32, i32
  }
}

</mosaic_0001>

<bundles_post_ra>
// kernel: cnn_forward.1
= control target key start
LH: loop header
LB: loop body
LE: loop exit
PB: predicated region body
PF: predicated region fallthrough
CT: control target
= control target key end

     0   :  { %s3508_s11 = smov 0   ;;  %s4228_s0 = inlined_call_operand.vmem [shape: f32[2,32,32], index: 0, kind: input, shape index: {}]   ;;  %s4229_s1 = inlined_call_operand.vmem [shape: f32[2,3,32,120], index: 1, kind: input, shape index: {}]   ;;  %s4230_s2 = inlined_call_operand.vmem [shape: f32[1,120], index: 2, kind: input, shape index: {}]   ;;  %s4231_s3 = inlined_call_operand.vmem [shape: f32[2,3,120,96], index: 3, kind: input, shape index: {}]   ;;  %s4232_s4 = inlined_call_operand.vmem [shape: f32[1,96], index: 4, kind: input, shape index: {}]   ;;  %s4233_s5 = inlined_call_operand.vmem [shape: f32[2,3,96,64], index: 5, kind: input, shape index: {}]   ;;  %s4234_s6 = inlined_call_operand.vmem [shape: f32[1,64], index: 6, kind: input, shape index: {}]   ;;  %s4235_s7 = inlined_call_operand.vmem [shape: f32[2,64], index: 7, kind: input, shape index: {}]   ;;  %s4236_s8 = inlined_call_operand.<no memory space> [shape: f32[1,1], index: 8, kind: input, shape index: {}]   ;;  %s4237_s9 = inlined_call_operand.vmem [shape: f32[2,1,1], index: 9, kind: output, shape index: {}]  }
   0x1   :  { %v14_v0 = vstv %s4236_s8 }
   0x2   :  { %15 = vst [vmem:[#allocation4] sm:$0x1] %v14_v0 }
   0x3 LB: > { %s2191_s12 = sadd.s32 4294967295, %s3450_s11   ;;  %p2195_p0 = scmp.ge.s32.totalorder %s3450_s11, 1  ;;  %s3450_s11 = sphi %s3508_s11, %s21_s11  }
   0x4   : > { %p289_p1 = scmp.lt.s32.totalorder %s3450_s11, 3 }
   0x6   : > { %p290_p2 = pnand %p2195_p0, %p289_p1 }
   0x7   : > { %v2202_v1 = vld [vmem:[%s4229_s1 + $0x20] sm:$0xff] (!%p290_p2)  ;;  %v2203_v2 = vld [vmem:[%s4229_s1 + $0x28] sm:$0xff] (!%p290_p2)  ;;  %p323_p3 = scmp.lt.s32.totalorder (!%p290_p2), %s2191_s12, 1  ;;  %v2204_v6 = vld [vmem:[%s4229_s1 + $0x30] sm:$0xff] (!%p290_p2)  ;;  %vm353_vm0 = vcmask (!%p290_p2), 261120   ;;  %vm947_vm1 = vcmask (!%p290_p2), 974848  }
   0x8   : > { %293 = sbr.rel (%p290_p2) target bundleno = 1022 (0x3fe), region = 56  ;;  %v2214_v3 = vld [vmem:[%s4229_s1 + $0x80] sm:$0xff] (!%p290_p2)  ;;  %v3073_v4 = vpack.c.bf16 (!%p290_p2), %v2203_v2, %v2202_v1  ;;  %v2215_v5 = vld [vmem:[%s4229_s1 + $0x88] sm:$0xff] (!%p290_p2)  ;;  %v2205_v7 = vld [vmem:[%s4229_s1 + $0x38] sm:$0xff] (!%p290_p2)  ;;  %vm949_vm2 = vcmask (!%p290_p2), 976898   ;;  %vm951_vm3 = vcmask (!%p290_p2), 978948  }
   0x9   : > { %v3089_v8 = vpack.c.bf16 (!%p290_p2), %v2215_v5, %v2214_v3  ;;  %v3077_v9 = vpack.c.bf16 (!%p290_p2), %v2205_v7, %v2204_v6  ;;  %v2216_v10 = vld [vmem:[%s4229_s1 + $0x90] sm:$0xff] (!%p290_p2)  ;;  %v2217_v11 = vld [vmem:[%s4229_s1 + $0x98] sm:$0xff] (!%p290_p2)  ;;  %v335_v12 = vld [vmem:[%s4229_s1] sm:$0xff] (!%p290_p2)  ;;  %vm953_vm4 = vcmask (!%p290_p2), 980998   ;;  %vm1032_vm5 = vcmask (!%p290_p2), 982016  }
   0xa   : > { %3074 = vmatprep.subr.bf16.mxu0 (!%p290_p2), %v3073_v4  ;;  %v3093_v13 = vpack.c.bf16 (!%p290_p2), %v2217_v11, %v2216_v10  ;;  %v336_v14 = vld [vmem:[%s4229_s1 + $0x8] sm:$0xff] (!%p290_p2)  ;;  %v2198_v15 = vld [vmem:[%s4229_s1 + $0x60] sm:$0xff] (!%p290_p2)  ;;  %v337_v20 = vld [vmem:[%s4229_s1 + $0x10] sm:$0xff] (!%p290_p2)  ;;  %vm3453_vm6 = vmmov (!%p290_p2), 0   ;;  %vm1571_vm7 = vcmask (!%p290_p2), 778240   ;;  %vm1573_vm8 = vcmask (!%p290_p2), 780290  }
   0xb   : > { %v2199_v16 = vld [vmem:[%s4229_s1 + $0x68] sm:$0xff] (!%p290_p2)  ;;  %3090 = vmatprep.subr.bf16.mxu1 (!%p290_p2), %v3089_v8  ;;  %3076 = vmatpush3.bf16.msra.mxu0 (!%p290_p2), %v3073_v4  ;;  %v3081_v17 = vpack.c.bf16 (!%p290_p2), %v336_v14, %v335_v12  ;;  %v338_v21 = vld [vmem:[%s4229_s1 + $0x18] sm:$0xff] (!%p290_p2)  ;;  %v2200_v23 = vld [vmem:[%s4229_s1 + $0x70] sm:$0xff] (!%p290_p2)  ;;  %vm1575_vm9 = vcmask (!%p290_p2), 782340   ;;  %vm1577_vm10 = vcmask (!%p290_p2), 784390   ;;  %vm1626_vm11 = vcmask (!%p290_p2), 785408  }
   0xc   : > { %3092 = vmatpush3.bf16.msra.mxu1 (!%p290_p2), %v3089_v8  ;;  %3078 = vmatprep.subr.bf16.mxu0 (!%p290_p2), %v3077_v9  ;;  %v3097_v19 = vpack.c.bf16 (!%p290_p2), %v2199_v16, %v2198_v15  ;;  %v2201_v24 = vld [vmem:[%s4229_s1 + $0x78] sm:$0xff] (!%p290_p2)  ;;  %v3085_v26 = vpack.c.bf16 (!%p290_p2), %v338_v21, %v337_v20  ;;  %v2226_v28 = vld [vmem:[%s4229_s1 + $0x40] sm:$0xff] (!%p290_p2)  ;;  %v2227_v29 = vld [vmem:[%s4229_s1 + $0x48] sm:$0xff] (!%p290_p2)  ;;  %vm2115_vm12 = vcmask (!%p290_p2), 516096   ;;  %vm2125_vm13 = vcmask (!%p290_p2), 518146  }
   0xd   : > { %3094 = vmatprep.subr.bf16.mxu1 (!%p290_p2), %v3093_v13  ;;  %v3101_v27 = vpack.c.bf16 (!%p290_p2), %v2201_v24, %v2200_v23  ;;  %v2234_v31 = vld [vmem:[%s4229_s1 + $0xa0] sm:$0xff] (!%p290_p2)  ;;  %v2235_v32 = vld [vmem:[%s4229_s1 + $0xa8] sm:$0xff] (!%p290_p2)  ;;  %v3105_v34 = vpack.c.bf16 (!%p290_p2), %v2227_v29, %v2226_v28  ;;  %v2228_v36 = vld [vmem:[%s4229_s1 + $0x50] sm:$0xff] (!%p290_p2)  ;;  %vm2142_vm14 = vcmask (!%p290_p2), 0  }
   0xe   : > { %v3113_v35 = vpack.c.bf16 (!%p290_p2), %v2235_v32, %v2234_v31  ;;  %v2229_v37 = vld [vmem:[%s4229_s1 + $0x58] sm:$0xff] (!%p290_p2)  ;;  %v2236_v39 = vld [vmem:[%s4229_s1 + $0xb0] sm:$0xff] (!%p290_p2)  ;;  %v2259_v45 = vld [vmem:[%s4231_s3 + $0x80] sm:$0xff] (!%p290_p2) }
   0xf   : > { %s4239_s12 = smov (!%p323_p3, %s2191_s12), 1  ;;  %3080 = vmatpush3.bf16.msra.mxu0 %v3077_v9  ;;  %v2237_v40 = vld [vmem:[%s4229_s1 + $0xb8] sm:$0xff]  ;;  %v3109_v42 = vpack.c.bf16 %v2229_v37, %v2228_v36  ;;  %v2277_v47 = vld [vmem:[%s4231_s3 + $0x1e0] sm:$0xff]  ;;  %v2278_v48 = vld [vmem:[%s4231_s3 + $0x1e8] sm:$0xff] }
  0x10   : > { %s2400_s16 = sshll.u32 %s4239_s12, 5  ;;  %3096 = vmatpush3.bf16.msra.mxu1 %v3093_v13  ;;  %3082 = vmatprep.subr.bf16.mxu0 %v3081_v17  ;;  %v3117_v43 = vpack.c.bf16 %v2237_v40, %v2236_v39  ;;  %v2258_v44 = vld [vmem:[%s4231_s3 + $0x78] sm:$0xff]  ;;  %v3177_v51 = vpack.c.bf16 %v2278_v48, %v2277_v47  ;;  %v2260_v52 = vld [vmem:[%s4231_s3 + $0x88] sm:$0xff]  ;;  %v2261_v53 = vld [vmem:[%s4231_s3 + $0x90] sm:$0xff]  ;;  %s330_s22 = scalar_lea.vmem %s4237_s9, %s4239_s12 }
  0x11   : > { %s3558_s19 = scalar_lea.vmem %s4228_s0, %s2400_s16  ;;  %3098 = vmatprep.subr.bf16.mxu1 %v3097_v19  ;;  %v3121_v50 = vpack.c.bf16 %v2259_v45, %v2258_v44  ;;  %v2279_v55 = vld [vmem:[%s4231_s3 + $0x1f0] sm:$0xff]  ;;  %v2280_v56 = vld [vmem:[%s4231_s3 + $0x1f8] sm:$0xff]  ;;  %v3125_v58 = vpack.c.bf16 %v2261_v53, %v2260_v52  ;;  %v2263_v62 = vld [vmem:[%s4231_s3 + $0xa0] sm:$0xff] }
  0x12   : > { %v344_v18 = vld [vmem:[%s3558_s19 + $0x1] sm:$0xff]  ;;  %v345_v22 = vld [vmem:[%s3558_s19 + $0x9] sm:$0xff]  ;;  %v346_v25 = vld [vmem:[%s3558_s19 + $0x11] sm:$0xff]  ;;  %v3181_v59 = vpack.c.bf16 %v2280_v56, %v2279_v55 }
  0x13   : > { %2637 = vmatprep.mubr.msk.f32.mxu0 %vm353_vm0, %v344_v18  ;;  %2665 = vmatprep.mubr.msk.f32.mxu1 %vm353_vm0, %v344_v18  ;;  %v347_v30 = vld [vmem:[%s3558_s19 + $0x19] sm:$0x3f]  ;;  %v331_v33 = vld [vmem:[%s3558_s19] sm:$0xff]  ;;  %v332_v38 = vld [vmem:[%s3558_s19 + $0x8] sm:$0xff] }
  0x14   : > { %2638 = vmatmul.mubr.msk.f32.vlgmr.msra.gmra.mrb[0].mxu0 %vm353_vm0, %v345_v22  ;;  %2666 = vmatmul.mubr.msk.f32.vlgmr.msra.gmra.mrb[0].mxu1 %vm353_vm0, %v345_v22  ;;  %v333_v41 = vld [vmem:[%s3558_s19 + $0x10] sm:$0xff]  ;;  %v334_v46 = vld [vmem:[%s3558_s19 + $0x18] sm:$0x3f]  ;;  %v723_v49 = vld [vmem:[%s3558_s19 + $0x2] sm:$0xff] }
  0x15   : > { %3084 = vmatpush3.bf16.msra.mxu0 %v3081_v17  ;;  %3100 = vmatpush3.bf16.msra.mxu1 %v3097_v19  ;;  %v724_v54 = vld [vmem:[%s3558_s19 + $0xa] sm:$0xff]  ;;  %v725_v57 = vld [vmem:[%s3558_s19 + $0x12] sm:$0xff]  ;;  %v726_v60 = vld [vmem:[%s3558_s19 + $0x1a] sm:$0x3f] }
  0x16   : > { %2640 = vmatprep.mubr.msk.f32.mxu0 %vm353_vm0, %v346_v25  ;;  %2668 = vmatprep.mubr.msk.f32.mxu1 %vm353_vm0, %v346_v25  ;;  %v2262_v61 = vld [vmem:[%s4231_s3 + $0x98] sm:$0xff]  ;;  %v2281_v63 = vld [vmem:[%s4231_s3 + $0x200] sm:$0xff]  ;;  %v2282_v1 = vld [vmem:[%s4231_s3 + $0x208] sm:$0xff] }
  0x17   : > { %3086 = vmatprep.subr.bf16.mxu0 %v3085_v26  ;;  %3102 = vmatprep.subr.bf16.mxu1 %v3101_v27  ;;  %v3129_v0 = vpack.c.bf16 %v2263_v62, %v2262_v61  ;;  %v3185_v2 = vpack.c.bf16 %v2282_v1, %v2281_v63  ;;  %v2264_v3 = vld [vmem:[%s4231_s3 + $0xa8] sm:$0xff]  ;;  %v2265_v4 = vld [vmem:[%s4231_s3 + $0xb0] sm:$0xff]  ;;  %v2284_v7 = vld [vmem:[%s4231_s3 + $0x218] sm:$0xff] }
  0x18   : > { %2641 = vmatmul.mubr.msk.f32.gmra.mrb[2].mxu0 %vm353_vm0, %v347_v30  ;;  %2669 = vmatmul.mubr.msk.f32.gmra.mrb[2].mxu1 %vm353_vm0, %v347_v30  ;;  %v3133_v5 = vpack.c.bf16 %v2265_v4, %v2264_v3  ;;  %v2283_v6 = vld [vmem:[%s4231_s3 + $0x210] sm:$0xff]  ;;  %v2266_v9 = vld [vmem:[%s4231_s3 + $0xb8] sm:$0xff]  ;;  %v2267_v10 = vld [vmem:[%s4231_s3 + $0xc0] sm:$0xff] }
  0x19   : > { %3088 = vmatpush3.bf16.msra.mxu0 %v3085_v26  ;;  %3104 = vmatpush3.bf16.msra.mxu1 %v3101_v27  ;;  %v3189_v8 = vpack.c.bf16 %v2284_v7, %v2283_v6  ;;  %v2285_v11 = vld [vmem:[%s4231_s3 + $0x220] sm:$0xff]  ;;  %v3137_v12 = vpack.c.bf16 %v2267_v10, %v2266_v9  ;;  %v2286_v13 = vld [vmem:[%s4231_s3 + $0x228] sm:$0xff]  ;;  %v2269_v16 = vld [vmem:[%s4231_s3 + $0xd0] sm:$0xff] }
  0x1a   : > { %2651 = vmatprep.mubr.msk.f32.mxu0 %vm353_vm0, %v331_v33  ;;  %2679 = vmatprep.mubr.msk.f32.mxu1 %vm353_vm0, %v331_v33  ;;  %v3193_v14 = vpack.c.bf16 %v2286_v13, %v2285_v11  ;;  %v2268_v15 = vld [vmem:[%s4231_s3 + $0xc8] sm:$0xff]  ;;  %v2287_v17 = vld [vmem:[%s4231_s3 + $0x230] sm:$0xff]  ;;  %v2288_v19 = vld [vmem:[%s4231_s3 + $0x238] sm:$0xff] }
  0x1b   : > { %3106 = vmatprep.subr.bf16.mxu0 %v3105_v34  ;;  %3114 = vmatprep.subr.bf16.mxu1 %v3113_v35  ;;  %v3141_v18 = vpack.c.bf16 %v2269_v16, %v2268_v15  ;;  %v3197_v20 = vpack.c.bf16 %v2288_v19, %v2287_v17  ;;  %v2270_v21 = vld [vmem:[%s4231_s3 + $0xd8] sm:$0xff]  ;;  %v2271_v22 = vld [vmem:[%s4231_s3 + $0xe0] sm:$0xff]  ;;  %v2290_v25 = vld [vmem:[%s4231_s3 + $0x248] sm:$0xff] }
  0x1c   : > { %2652 = vmatmul.mubr.msk.f32.vlgmr.msra.gmra.mrb[0].mxu0 %vm353_vm0, %v332_v38  ;;  %2680 = vmatmul.mubr.msk.f32.vlgmr.msra.gmra.mrb[0].mxu1 %vm353_vm0, %v332_v38  ;;  %v2289_v23 = vld [vmem:[%s4231_s3 + $0x240] sm:$0xff]  ;;  %v3145_v24 = vpack.c.bf16 %v2271_v22, %v2270_v21  ;;  %v2272_v27 = vld [vmem:[%s4231_s3 + $0xe8] sm:$0xff]  ;;  %v2291_v28 = vld [vmem:[%s4231_s3 + $0x250] sm:$0xff] }
  0x1d   : > { %3108 = vmatpush3.bf16.msra.mxu0 %v3105_v34  ;;  %3116 = vmatpush3.bf16.msra.mxu1 %v3113_v35  ;;  %v3201_v26 = vpack.c.bf16 %v2290_v25, %v2289_v23  ;;  %v983_v29 = vld [vmem:[%s4231_s3] sm:$0xff]  ;;  %v984_v30 = vld [vmem:[%s4231_s3 + $0x8] sm:$0xff]  ;;  %v2244_v33 = vld [vmem:[%s4231_s3 + $0x170] sm:$0xff] }
  0x1e   : > { %2654 = vmatprep.mubr.msk.f32.mxu0 %vm353_vm0, %v333_v41  ;;  %2682 = vmatprep.mubr.msk.f32.mxu1 %vm353_vm0, %v333_v41  ;;  %v2243_v31 = vld [vmem:[%s4231_s3 + $0x168] sm:$0xff]  ;;  %v3731_v32 = vpack.c.bf16 %v984_v30, %v983_v29  ;;  %v2242_v37 = vld [vmem:[%s4230_s2] ss:$0 sm:$0xff]  ;;  %v986_v1 = vld [vmem:[%s4231_s3 + $0x18] sm:$0xff] }
  0x1f   : > { %3110 = vmatprep.subr.bf16.mxu0 %v3109_v42  ;;  %3118 = vmatprep.subr.bf16.mxu1 %v3117_v43  ;;  %v3736_v34 = vpack.c.bf16 %v2244_v33, %v2243_v31  ;;  %v2246_v3 = vld [vmem:[%s4231_s3 + $0x180] sm:$0xff]  ;;  %v988_v9 = vld [vmem:[%s4231_s3 + $0x28] sm:$0xff]  ;;  %v2248_v11 = vld [vmem:[%s4231_s3 + $0x190] sm:$0xff] }
  0x20   : > { %2655 = vmatmul.mubr.msk.f32.gmra.mrb[2].mxu0 %vm353_vm0, %v334_v46  ;;  %2683 = vmatmul.mubr.msk.f32.gmra.mrb[2].mxu1 %vm353_vm0, %v334_v46  ;;  %v987_v6 = vld [vmem:[%s4231_s3 + $0x20] sm:$0xff]  ;;  %v2247_v10 = vld [vmem:[%s4231_s3 + $0x188] sm:$0xff]  ;;  %v989_v15 = vld [vmem:[%s4231_s3 + $0x30] sm:$0xff] }
  0x21   : > { %3112 = vmatpush3.bf16.msra.mxu0 %v3109_v42  ;;  %3120 = vmatpush3.bf16.msra.mxu1 %v3117_v43  ;;  %v3157_v13 = vpack.c.bf16 %v988_v9, %v987_v6  ;;  %v990_v16 = vld [vmem:[%s4231_s3 + $0x38] sm:$0xff]  ;;  %v991_v21 = vld [vmem:[%s4231_s3 + $0x40] sm:$0xff]  ;;  %v992_v22 = vld [vmem:[%s4231_s3 + $0x48] sm:$0xff] }
  0x22   : > { %2693 = vmatprep.mubr.msk.f32.mxu0 %vm353_vm0, %v723_v49  ;;  %2707 = vmatprep.mubr.msk.f32.mxu1 %vm353_vm0, %v723_v49  ;;  %v2249_v17 = vld [vmem:[%s4231_s3 + $0x198] sm:$0xff]  ;;  %v3161_v19 = vpack.c.bf16 %v990_v16, %v989_v15  ;;  %v2251_v23 = vld [vmem:[%s4231_s3 + $0x1a8] sm:$0xff]  ;;  %v3165_v25 = vpack.c.bf16 %v992_v22, %v991_v21  ;;  %v2254_v30 = vld [vmem:[%s4231_s3 + $0x1c0] sm:$0xff] }
  0x23   : > { %3122 = vmatprep.subr.bf16.mxu0 %v3121_v50  ;;  %3178 = vmatprep.subr.bf16.mxu1 %v3177_v51  ;;  %v2253_v29 = vld [vmem:[%s4231_s3 + $0x1b8] sm:$0xff]  ;;  %v995_v33 = vld [vmem:[%s4231_s3 + $0x60] sm:$0xff]  ;;  %v2308_v15 = vld [vmem:[%s4231_s3 + $0x150] sm:$0xff] }
  0x24   : > { %2694 = vmatmul.mubr.msk.f32.vlgmr.msra.gmra.mrb[0].mxu0 %vm353_vm0, %v724_v54  ;;  %2708 = vmatmul.mubr.msk.f32.vlgmr.msra.gmra.mrb[0].mxu1 %vm353_vm0, %v724_v54  ;;  %v2322_v6 = vld [vmem:[%s4231_s3 + $0x2a0] sm:$0xff]  ;;  %v2309_v16 = vld [vmem:[%s4231_s3 + $0x158] sm:$0xff]  ;;  %v2327_v22 = vld [vmem:[%s4231_s3 + $0x2c8] sm:$0xff] }
  0x25   : > { %2696 = vmatprep.mubr.msk.f32.mxu0 %vm353_vm0, %v725_v57  ;;  %2710 = vmatprep.mubr.msk.f32.mxu1 %vm353_vm0, %v725_v57  ;;  %v2306_v9 = vld [vmem:[%s4231_s3 + $0x140] sm:$0xff] }
  0x26   : > { %3124 = vmatpush3.bf16.msra.mxu0 %v3121_v50  ;;  %3180 = vmatpush3.bf16.msra.mxu1 %v3177_v51  ;;  %v2310_v21 = vld [vmem:[%s4231_s3 + $0x160] sm:$0xff] }
  0x27   : > { %3126 = vmatprep.subr.bf16.mxu0 %v3125_v58  ;;  %3182 = vmatprep.subr.bf16.mxu1 %v3181_v59 }
  0x28   : > { %2697 = vmatmul.mubr.msk.f32.gmra.mrb[2].mxu0 %vm353_vm0, %v726_v60  ;;  %2711 = vmatmul.mubr.msk.f32.gmra.mrb[2].mxu1 %vm353_vm0, %v726_v60 }
  0x2a   : > { %3128 = vmatpush3.bf16.msra.mxu0 %v3125_v58  ;;  %3184 = vmatpush3.bf16.msra.mxu1 %v3181_v59 }
  0x2b   : > { %3130 = vmatprep.subr.bf16.mxu0 %v3129_v0  ;;  %3186 = vmatprep.subr.bf16.mxu1 %v3185_v2 }
  0x2e   : > { %3132 = vmatpush3.bf16.msra.mxu0 %v3129_v0  ;;  %3188 = vmatpush3.bf16.msra.mxu1 %v3185_v2  ;;  %v985_v0 = vld [vmem:[%s4231_s3 + $0x10] sm:$0xff]  ;;  %v2245_v2 = vld [vmem:[%s4231_s3 + $0x178] sm:$0xff] }
  0x2f   : > { %3134 = vmatprep.subr.bf16.mxu0 %v3133_v5  ;;  %3190 = vmatprep.subr.bf16.mxu1 %v3189_v8  ;;  %v3153_v7 = vpack.c.bf16 %v986_v1, %v985_v0  ;;  %v2320_v0 = vld [vmem:[%s4231_s3 + $0x290] sm:$0xff] }
  0x32   : > { %3136 = vmatpush3.bf16.msra.mxu0 %v3133_v5  ;;  %3192 = vmatpush3.bf16.msra.mxu1 %v3189_v8  ;;  %v3209_v8 = vpack.c.bf16 %v2246_v3, %v2245_v2  ;;  %v2304_v3 = vld [vmem:[%s4231_s3 + $0x130] sm:$0xff] }
  0x33   : > { %3138 = vmatprep.subr.bf16.mxu0 %v3137_v12  ;;  %3194 = vmatprep.subr.bf16.mxu1 %v3193_v14 }
  0x36   : > { %3140 = vmatpush3.bf16.msra.mxu0 %v3137_v12  ;;  %3196 = vmatpush3.bf16.msra.mxu1 %v3193_v14  ;;  %v3213_v14 = vpack.c.bf16 %v2248_v11, %v2247_v10  ;;  %v2307_v10 = vld [vmem:[%s4231_s3 + $0x148] sm:$0xff] }
  0x37   : > { %3142 = vmatprep.subr.bf16.mxu0 %v3141_v18  ;;  %3198 = vmatprep.subr.bf16.mxu1 %v3197_v20  ;;  %v2323_v11 = vld [vmem:[%s4231_s3 + $0x2a8] sm:$0xff] }
  0x3a   : > { %3144 = vmatpush3.bf16.msra.mxu0 %v3141_v18  ;;  %3200 = vmatpush3.bf16.msra.mxu1 %v3197_v20  ;;  %v2250_v18 = vld [vmem:[%s4231_s3 + $0x1a0] sm:$0xff] }
  0x3b   : > { %3146 = vmatprep.subr.bf16.mxu0 %v3145_v24  ;;  %3202 = vmatprep.subr.bf16.mxu1 %v3201_v26  ;;  %v3217_v20 = vpack.c.bf16 %v2250_v18, %v2249_v17  ;;  %v2325_v17 = vld [vmem:[%s4231_s3 + $0x2b8] sm:$0xff]  ;;  %v2326_v18 = vld [vmem:[%s4231_s3 + $0x2c0] sm:$0xff] }
  0x3e   : > { %3148 = vmatpush3.bf16.msra.mxu0 %v3145_v24  ;;  %3204 = vmatpush3.bf16.msra.mxu1 %v3201_v26  ;;  %v2252_v24 = vld [vmem:[%s4231_s3 + $0x1b0] sm:$0xff] }
  0x3f   : > { %2741 = vmatprep.subr.mxu0 %v2272_v27  ;;  %2807 = vmatprep.subr.mxu1 %v2291_v28  ;;  %v3221_v26 = vpack.c.bf16 %v2252_v24, %v2251_v23  ;;  %v2343_v23 = vld [vmem:[%s4233_s5 + $0x60] sm:$0xff]  ;;  %v2344_v24 = vld [vmem:[%s4233_s5 + $0x68] sm:$0xff] }
  0x42   : > { %2742 = vmatpush3.msra.mxu0 %v2272_v27  ;;  %2808 = vmatpush3.msra.mxu1 %v2291_v28  ;;  %v993_v27 = vld [vmem:[%s4231_s3 + $0x50] sm:$0xff]  ;;  %v994_v28 = vld [vmem:[%s4231_s3 + $0x58] sm:$0xff] }
  0x43   : > { %3150 = vmatprep.subr.bf16.mxu0 %v3731_v32  ;;  %3206 = vmatprep.subr.bf16.mxu1 %v3736_v34  ;;  %v3169_v31 = vpack.c.bf16 %v994_v28, %v993_v27  ;;  %v3290_v27 = vpack.c.bf16 %v2344_v24, %v2343_v23 }
  0xf7   : > { %v2695_v35 = vpop.f32.mrb[0].mxu0  ;;  %v2709_v36 = vpop.f32.mrb[0].mxu1 }
  0xf8   : > { %v810_v38 = vpop.f32.mrb[1].mxu0  ;;  %v928_v39 = vmax.f32 %v2695_v35, %v2709_v36  ;;  %v904_v40 = vpop.f32.mrb[1].mxu1  ;;  %v2255_v35 = vld [vmem:[%s4231_s3 + $0x1c8] sm:$0xff]  ;;  %v2256_v36 = vld [vmem:[%s4231_s3 + $0x1d0] sm:$0xff] }
  0xf9   : > { %v927_v41 = vmax.f32 %v810_v38, %v904_v40  ;;  %v3229_v38 = vpack.c.bf16 %v2256_v36, %v2255_v35  ;;  %v2257_v40 = vld [vmem:[%s4231_s3 + $0x1d8] sm:$0xff] }
  0xfa   : > { %v939_v42 = vadd.f32 %v2242_v37, %v928_v39  ;;  %v997_v39 = vld [vmem:[%s4231_s3 + $0x70] sm:$0xff]  ;;  %v2360_v35 = vld [vmem:[%s4233_s5 + $0x198] sm:$0xff] }
  0xfb   : > { %v2698_v43 = vpop.f32.mrb[2].mxu0  ;;  %v938_v44 = vadd.f32 %v2242_v37, %v927_v41  ;;  %v2712_v45 = vpop.f32.mrb[2].mxu1  ;;  %v2296_v41 = vld [vmem:[%s4231_s3 + $0xf0] sm:$0xff] }
  0xfc   : > { %v820_v46 = vpop.f32.mrb[3].mxu0  ;;  %v956_v47 = vrot.slane %v939_v42, 1  ;;  %v930_v48 = vmax.f32 %v2698_v43, %v2712_v45  ;;  %v914_v49 = vpop.f32.mrb[3].mxu1  ;;  %v2313_v43 = vld [vmem:[%s4231_s3 + $0x258] sm:$0xff]  ;;  %v2298_v45 = vld [vmem:[%s4231_s3 + $0x100] sm:$0xff] }
  0xfd   : > { %v943_v50 = vrot.slane %v938_v44, 1  ;;  %v929_v51 = vmax.f32 %v820_v46, %v914_v49  ;;  %v2315_v49 = vld [vmem:[%s4231_s3 + $0x268] sm:$0xff] }
  0xfe   : > { %v958_v52 = vmax.f32 %v939_v42, %v956_v47  ;;  %v941_v53 = vadd.f32 %v2242_v37, %v930_v48  ;;  %v2297_v42 = vld [vmem:[%s4231_s3 + $0xf8] sm:$0xff]  ;;  %v2299_v48 = vld [vmem:[%s4231_s3 + $0x108] sm:$0xff] }
  0xff   : > { %v945_v54 = vmax.f32 %v938_v44, %v943_v50  ;;  %v940_v55 = vadd.f32 %v2242_v37, %v929_v51  ;;  %v2314_v44 = vld [vmem:[%s4231_s3 + $0x260] sm:$0xff]  ;;  %v3233_v46 = vpack.c.bf16 %v2297_v42, %v2296_v41  ;;  %v2316_v50 = vld [vmem:[%s4231_s3 + $0x270] sm:$0xff]  ;;  %v2362_v41 = vld [vmem:[%s4233_s5 + $0x1a8] sm:$0xff] }
 0x100   : > { %v959_v56 = vmax.f32 %v958_v52, 0.0  ;;  %v974_v57 = vrot.slane %v941_v53, 1  ;;  %v3261_v47 = vpack.c.bf16 %v2314_v44, %v2313_v43  ;;  %v3237_v52 = vpack.c.bf16 %v2299_v48, %v2298_v45  ;;  %v2349_v43 = vld [vmem:[%s4233_s5 + $0x90] sm:$0xff]  ;;  %v2350_v44 = vld [vmem:[%s4233_s5 + $0x98] sm:$0xff] }
 0x101   : > { %v946_v58 = vmax.f32 %v945_v54, 0.0  ;;  %v965_v59 = vrot.slane %v940_v55, 1  ;;  %v2300_v54 = vld [vmem:[%s4231_s3 + $0x110] sm:$0xff] }
 0x102   : > { %960 = vst.msk [vmem:[#allocation2 + $0x4] sm:$0x1] %vm947_vm1, %v959_v56  ;;  %v976_v60 = vmax.f32 %v941_v53, %v974_v57  ;;  %v3265_v53 = vpack.c.bf16 %v2316_v50, %v2315_v49  ;;  %v2317_v57 = vld [vmem:[%s4231_s3 + $0x278] sm:$0xff]  ;;  %v2363_v45 = vld [vmem:[%s4233_s5 + $0x1b0] sm:$0xff]  ;;  %v2351_v49 = vld [vmem:[%s4233_s5 + $0xa0] sm:$0xff] }
 0x103   : > { %961 = vst.msk [vmem:[#allocation2 + $0x3] sm:$0x4] %vm949_vm2, %v959_v56  ;;  %950 = vst.msk [vmem:[#allocation2 - $0x1] sm:$0x4] %vm949_vm2, %v946_v58  ;;  %v967_v61 = vmax.f32 %v940_v55, %v965_v59  ;;  %v2301_v55 = vld [vmem:[%s4231_s3 + $0x118] sm:$0xff]  ;;  %v2352_v50 = vld [vmem:[%s4233_s5 + $0xa8] sm:$0xff] }
 0x104   : > { %962 = vst.msk [vmem:[#allocation2 + $0x2] sm:$0x10] %vm951_vm3, %v959_v56  ;;  %952 = vst.msk [vmem:[#allocation2 - $0x2] sm:$0x10] %vm951_vm3, %v946_v58  ;;  %v977_v62 = vmax.f32 %v976_v60, 0.0  ;;  %v3241_v59 = vpack.c.bf16 %v2301_v55, %v2300_v54  ;;  %v2353_v55 = vld [vmem:[%s4233_s5 + $0xb0] sm:$0xff] }
 0x105   : > { %963 = vst.msk [vmem:[#allocation2 + $0x1] sm:$0x40] %vm953_vm4, %v959_v56  ;;  %954 = vst.msk [vmem:[#allocation2 - $0x3] sm:$0x40] %vm953_vm4, %v946_v58  ;;  %v968_v63 = vmax.f32 %v967_v61, 0.0  ;;  %v2302_v61 = vld [vmem:[%s4231_s3 + $0x120] sm:$0xff] }
 0x106   : > { %948 = vst.msk [vmem:[#allocation2] sm:$0x1] %vm947_vm1, %v946_v58  ;;  %978 = vst.msk [vmem:[#allocation2 + $0xc] sm:$0x1] %vm947_vm1, %v977_v62  ;;  %v2318_v58 = vld [vmem:[%s4231_s3 + $0x280] sm:$0xff] }
 0x107   : > { %979 = vst.msk [vmem:[#allocation2 + $0xb] sm:$0x4] %vm949_vm2, %v977_v62  ;;  %970 = vst.msk [vmem:[#allocation2 + $0x7] sm:$0x4] %vm949_vm2, %v968_v63  ;;  %v3269_v60 = vpack.c.bf16 %v2318_v58, %v2317_v57  ;;  %v2303_v62 = vld [vmem:[%s4231_s3 + $0x128] sm:$0xff]  ;;  %v2367_v57 = vld [vmem:[%s4233_s5 + $0x1d0] sm:$0xff] }
 0x108   : > { %969 = vst.msk [vmem:[#allocation2 + $0x8] sm:$0x1] %vm947_vm1, %v968_v63  ;;  %v3245_v1 = vpack.c.bf16 %v2303_v62, %v2302_v61  ;;  %v3454_v61 = vmov 0.0  }
 0x109   : > { %971 = vst.msk [vmem:[#allocation2 + $0x6] sm:$0x10] %vm951_vm3, %v968_v63 }
 0x10a   : > { %972 = vst.msk [vmem:[#allocation2 + $0x5] sm:$0x40] %vm953_vm4, %v968_v63  ;;  %v2319_v63 = vld [vmem:[%s4231_s3 + $0x288] sm:$0xff] }
 0x10b   : > { %v3273_v2 = vpack.c.bf16 %v2320_v0, %v2319_v63  ;;  %v2330_v0 = vld [vmem:[%s4232_s4] ss:$0 sm:$0xff] }
 0x10d   : > { %v981_v12 = vld [vmem:[#allocation2] sm:$0xff] }
 0x10f   : > { %v1014_v4 = vld [vmem:[#allocation2 + $0x1] sm:$0xff] }
 0x110   : > { %2743 = vmatprep.mubr.msk.f32.mxu0 %vm1032_vm5, %v1014_v4  ;;  %2809 = vmatprep.mubr.msk.f32.mxu1 %vm1032_vm5, %v1014_v4  ;;  %v1361_v56 = vld [vmem:[#allocation2 + $0x2] sm:$0xff]  ;;  %v2305_v4 = vld [vmem:[%s4231_s3 + $0x138] sm:$0xff] }
 0x111   : > { %v1015_v5 = vld [vmem:[#allocation2 + $0x9] sm:$0xf] }
 0x112   : > { %2744 = vmatmul.mubr.msk.f32.vlgmr.msra.gmra.mrb[4].mxu0 %vm1032_vm5, %v1015_v5  ;;  %2810 = vmatmul.mubr.msk.f32.vlgmr.msra.gmra.mrb[4].mxu1 %vm1032_vm5, %v1015_v5  ;;  %v982_v51 = vld [vmem:[#allocation2 + $0x8] sm:$0xf]  ;;  %v2321_v5 = vld [vmem:[%s4231_s3 + $0x298] sm:$0xff] }
 0x113   : > { %3152 = vmatpush3.bf16.msra.mxu0 %v3731_v32  ;;  %3208 = vmatpush3.bf16.msra.mxu1 %v3736_v34  ;;  %v3225_v32 = vpack.c.bf16 %v2254_v30, %v2253_v29  ;;  %v996_v34 = vld [vmem:[%s4231_s3 + $0x68] sm:$0xff]  ;;  %v3452_v30 = vmov 0.0|0.0  }
 0x114   : > { %2776 = vmatprep.mubr.msk.f32.mxu0 %vm1032_vm5, %v981_v12  ;;  %2842 = vmatprep.mubr.msk.f32.mxu1 %vm1032_vm5, %v981_v12  ;;  %v3173_v37 = vpack.c.bf16 %v996_v34, %v995_v33  ;;  %v2324_v12 = vld [vmem:[%s4231_s3 + $0x2b0] sm:$0xff]  ;;  %v1362_v28 = vld [vmem:[#allocation2 + $0xa] sm:$0xf] }
 0x115   : > { %3154 = vmatprep.subr.bf16.mxu0 %v3153_v7  ;;  %3210 = vmatprep.subr.bf16.mxu1 %v3209_v8  ;;  %v2359_v33 = vld [vmem:[%s4233_s5 + $0x190] sm:$0xff] }
 0x116   : > { %v3329_v36 = vpack.c.bf16 %v2360_v35, %v2359_v33  ;;  %v1593_v33 = vld [vmem:[%s4233_s5 + $0x30] sm:$0xff] }
 0x117   : > { %3156 = vmatpush3.bf16.msra.mxu0 %v3153_v7  ;;  %3212 = vmatpush3.bf16.msra.mxu1 %v3209_v8  ;;  %v3249_v7 = vpack.c.bf16 %v2305_v4, %v2304_v3  ;;  %v3277_v8 = vpack.c.bf16 %v2322_v6, %v2321_v5  ;;  %v2337_v35 = vld [vmem:[%s4233_s5 + $0x150] sm:$0xff] }
 0x118   : > { %3158 = vmatprep.subr.bf16.mxu0 %v3157_v13  ;;  %3214 = vmatprep.subr.bf16.mxu1 %v3213_v14 }
 0x11b   : > { %3160 = vmatpush3.bf16.msra.mxu0 %v3157_v13  ;;  %3216 = vmatpush3.bf16.msra.mxu1 %v3213_v14  ;;  %v3253_v13 = vpack.c.bf16 %v2307_v10, %v2306_v9  ;;  %v3281_v14 = vpack.c.bf16 %v2324_v12, %v2323_v11 }
 0x11c   : > { %3162 = vmatprep.subr.bf16.mxu0 %v3161_v19  ;;  %3218 = vmatprep.subr.bf16.mxu1 %v3217_v20 }
 0x11f   : > { %3164 = vmatpush3.bf16.msra.mxu0 %v3161_v19  ;;  %3220 = vmatpush3.bf16.msra.mxu1 %v3217_v20  ;;  %v3257_v19 = vpack.c.bf16 %v2309_v16, %v2308_v15  ;;  %v3285_v20 = vpack.c.bf16 %v2326_v18, %v2325_v17  ;;  %v2331_v15 = vld [vmem:[%s4233_s5 + $0x120] sm:$0xff]  ;;  %v2332_v16 = vld [vmem:[%s4233_s5 + $0x128] sm:$0xff] }
 0x120   : > { %3166 = vmatprep.subr.bf16.mxu0 %v3165_v25  ;;  %3222 = vmatprep.subr.bf16.mxu1 %v3221_v26  ;;  %v3344_v18 = vpack.c.bf16 %v2332_v16, %v2331_v15  ;;  %v2393_v15 = vld [vmem:[%s4233_s5 + $0x228] sm:$0xff] }
 0x123   : > { %3168 = vmatpush3.bf16.msra.mxu0 %v3165_v25  ;;  %3224 = vmatpush3.bf16.msra.mxu1 %v3221_v26  ;;  %v2357_v25 = vld [vmem:[%s4233_s5 + $0x180] sm:$0xff]  ;;  %v2358_v26 = vld [vmem:[%s4233_s5 + $0x188] sm:$0xff] }
 0x124   : > { %3170 = vmatprep.subr.bf16.mxu0 %v3169_v31  ;;  %3226 = vmatprep.subr.bf16.mxu1 %v3225_v32  ;;  %v3326_v29 = vpack.c.bf16 %v2358_v26, %v2357_v25  ;;  %v1591_v26 = vld [vmem:[%s4233_s5 + $0x20] sm:$0xff] }
 0x127   : > { %3172 = vmatpush3.bf16.msra.mxu0 %v3169_v31  ;;  %3228 = vmatpush3.bf16.msra.mxu1 %v3225_v32  ;;  %v2345_v31 = vld [vmem:[%s4233_s5 + $0x70] sm:$0xff]  ;;  %v2346_v32 = vld [vmem:[%s4233_s5 + $0x78] sm:$0xff] }
 0x128   : > { %3174 = vmatprep.subr.bf16.mxu0 %v3173_v37  ;;  %3230 = vmatprep.subr.bf16.mxu1 %v3229_v38  ;;  %v3293_v34 = vpack.c.bf16 %v2346_v32, %v2345_v31 }
 0x12b   : > { %3176 = vmatpush3.bf16.msra.mxu0 %v3173_v37  ;;  %3232 = vmatpush3.bf16.msra.mxu1 %v3229_v38  ;;  %v2347_v37 = vld [vmem:[%s4233_s5 + $0x80] sm:$0xff]  ;;  %v2348_v38 = vld [vmem:[%s4233_s5 + $0x88] sm:$0xff] }
 0x12c   : > { %2774 = vmatprep.subr.mxu0 %v997_v39  ;;  %2840 = vmatprep.subr.mxu1 %v2257_v40 }
 0x12f   : > { %2775 = vmatpush3.msra.mxu0 %v997_v39  ;;  %2841 = vmatpush3.msra.mxu1 %v2257_v40  ;;  %v3296_v39 = vpack.c.bf16 %v2348_v38, %v2347_v37  ;;  %v2361_v40 = vld [vmem:[%s4233_s5 + $0x1a0] sm:$0xff] }
 0x130   : > { %2777 = vmatmul.mubr.msk.f32.vlgmr.msra.gmra.mrb[4].mxu0 %vm1032_vm5, %v982_v51  ;;  %2843 = vmatmul.mubr.msk.f32.vlgmr.msra.gmra.mrb[4].mxu1 %vm1032_vm5, %v982_v51  ;;  %v3332_v42 = vpack.c.bf16 %v2362_v41, %v2361_v40  ;;  %v2365_v51 = vld [vmem:[%s4233_s5 + $0x1c0] sm:$0xff]  ;;  %v1596_v40 = vld [vmem:[%s4233_s5 + $0x48] sm:$0xff] }
 0x131   : > { %3234 = vmatprep.subr.bf16.mxu0 %v3233_v46  ;;  %3262 = vmatprep.subr.bf16.mxu1 %v3261_v47  ;;  %v2339_v41 = vld [vmem:[%s4233_s5 + $0x160] sm:$0xff] }
 0x132   : > { %3236 = vmatpush3.bf16.msra.mxu0 %v3233_v46  ;;  %2875 = vmatprep.mubr.msk.f32.mxu0 %vm1032_vm5, %v1361_v56  ;;  %v3299_v46 = vpack.c.bf16 %v2350_v44, %v2349_v43 }
 0x133   : > { %3264 = vmatpush3.bf16.msra.mxu1 %v3261_v47  ;;  %2908 = vmatprep.mubr.msk.f32.mxu1 %vm1032_vm5, %v1361_v56  ;;  %v2364_v47 = vld [vmem:[%s4233_s5 + $0x1b8] sm:$0xff] }
 0x134   : > { %3238 = vmatprep.subr.bf16.mxu0 %v3237_v52  ;;  %3266 = vmatprep.subr.bf16.mxu1 %v3265_v53  ;;  %v3335_v48 = vpack.c.bf16 %v2364_v47, %v2363_v45  ;;  %v2354_v56 = vld [vmem:[%s4233_s5 + $0xb8] sm:$0xff]  ;;  %v1597_v45 = vld [vmem:[%s4233_s5 + $0x50] sm:$0xff] }
 0x135   : > { %v3305_v58 = vpack.c.bf16 %v2354_v56, %v2353_v55  ;;  %v2341_v47 = vld [vmem:[%s4233_s5 + $0x170] sm:$0xff] }
 0x136   : > { %3240 = vmatpush3.bf16.msra.mxu0 %v3237_v52  ;;  %v3302_v52 = vpack.c.bf16 %v2352_v50, %v2351_v49 }
 0x137   : > { %3268 = vmatpush3.bf16.msra.mxu1 %v3265_v53  ;;  %3242 = vmatprep.subr.bf16.mxu0 %v3241_v59  ;;  %v2366_v53 = vld [vmem:[%s4233_s5 + $0x1c8] sm:$0xff] }
 0x138   : > { %3270 = vmatprep.subr.bf16.mxu1 %v3269_v60  ;;  %v3338_v54 = vpack.c.bf16 %v2366_v53, %v2365_v51  ;;  %v2371_v51 = vld [vmem:[%s4233_s5 + $0xc0] sm:$0xff] }
 0x139   : > { %v2384_v53 = vld [vmem:[%s4233_s5 + $0x1e0] sm:$0xff] }
 0x13a   : > { %3244 = vmatpush3.bf16.msra.mxu0 %v3241_v59  ;;  %v2368_v59 = vld [vmem:[%s4233_s5 + $0x1d8] sm:$0xff] }
 0x13b   : > { %3272 = vmatpush3.bf16.msra.mxu1 %v3269_v60  ;;  %3246 = vmatprep.subr.bf16.mxu0 %v3245_v1  ;;  %v3341_v60 = vpack.c.bf16 %v2368_v59, %v2367_v57  ;;  %v2373_v57 = vld [vmem:[%s4233_s5 + $0xd0] sm:$0xff] }
 0x13c   : > { %3274 = vmatprep.subr.bf16.mxu1 %v3273_v2  ;;  %v2386_v59 = vld [vmem:[%s4233_s5 + $0x1f0] sm:$0xff] }
 0x13e   : > { %3248 = vmatpush3.bf16.msra.mxu0 %v3245_v1 }
 0x13f   : > { %3276 = vmatpush3.bf16.msra.mxu1 %v3273_v2  ;;  %3250 = vmatprep.subr.bf16.mxu0 %v3249_v7 }
 0x140   : > { %3278 = vmatprep.subr.bf16.mxu1 %v3277_v8 }
 0x142   : > { %3252 = vmatpush3.bf16.msra.mxu0 %v3249_v7 }
 0x143   : > { %3280 = vmatpush3.bf16.msra.mxu1 %v3277_v8  ;;  %3254 = vmatprep.subr.bf16.mxu0 %v3253_v13 }
 0x144   : > { %3282 = vmatprep.subr.bf16.mxu1 %v3281_v14 }
 0x146   : > { %3256 = vmatpush3.bf16.msra.mxu0 %v3253_v13  ;;  %v1587_v13 = vld [vmem:[%s4233_s5] sm:$0xff] }
 0x147   : > { %3284 = vmatpush3.bf16.msra.mxu1 %v3281_v14  ;;  %3258 = vmatprep.subr.bf16.mxu0 %v3257_v19  ;;  %v1588_v14 = vld [vmem:[%s4233_s5 + $0x8] sm:$0xff] }
 0x148   : > { %3286 = vmatprep.subr.bf16.mxu1 %v3285_v20  ;;  %v3308_v17 = vpack.c.bf16 %v1588_v14, %v1587_v13  ;;  %v2380_v13 = vld [vmem:[%s4233_s5 + $0x108] sm:$0xff]  ;;  %v2392_v14 = vld [vmem:[%s4233_s5 + $0x220] sm:$0xff] }
 0x14a   : > { %3260 = vmatpush3.bf16.msra.mxu0 %v3257_v19  ;;  %v1589_v19 = vld [vmem:[%s4233_s5 + $0x10] sm:$0xff] }
 0x14b   : > { %3288 = vmatpush3.bf16.msra.mxu1 %v3285_v20  ;;  %2873 = vmatprep.subr.mxu0 %v2310_v21  ;;  %v1590_v20 = vld [vmem:[%s4233_s5 + $0x18] sm:$0xff] }
 0x14c   : > { %2906 = vmatprep.subr.mxu1 %v2327_v22  ;;  %v3311_v24 = vpack.c.bf16 %v1590_v20, %v1589_v19  ;;  %v2382_v19 = vld [vmem:[%s4233_s5 + $0x118] sm:$0xff]  ;;  %v2394_v20 = vld [vmem:[%s4233_s5 + $0x230] sm:$0xff] }
 0x14e   : > { %2874 = vmatpush3.msra.mxu0 %v2310_v21  ;;  %v2333_v21 = vld [vmem:[%s4233_s5 + $0x130] sm:$0xff] }
 0x14f   : > { %2907 = vmatpush3.msra.mxu1 %v2327_v22  ;;  %2876 = vmatmul.mubr.msk.f32.vlgmr.msra.gmra.mrb[4].mxu0 %vm1032_vm5, %v1362_v28  ;;  %v2334_v22 = vld [vmem:[%s4233_s5 + $0x138] sm:$0xff] }
 0x150   : > { %2909 = vmatmul.mubr.msk.f32.vlgmr.msra.gmra.mrb[4].mxu1 %vm1032_vm5, %v1362_v28  ;;  %3289 = vmatprep.subr.bf16.mxu0 %v3452_v30  ;;  %v3347_v25 = vpack.c.bf16 %v2334_v22, %v2333_v21  ;;  %v2335_v28 = vld [vmem:[%s4233_s5 + $0x140] sm:$0xff]  ;;  %v2395_v21 = vld [vmem:[%s4233_s5 + $0x238] sm:$0xff] }
 0x151   : > { %3325 = vmatprep.subr.bf16.mxu1 %v3452_v30  ;;  %3291 = vmatpush3.bf16.msra.mxu0 %v3290_v27  ;;  %v1592_v27 = vld [vmem:[%s4233_s5 + $0x28] sm:$0xff] }
 0x152   : > { %3327 = vmatpush3.bf16.msra.mxu1 %v3326_v29  ;;  %3292 = vmatprep.subr.bf16.mxu0 %v3452_v30  ;;  %v2336_v29 = vld [vmem:[%s4233_s5 + $0x148] sm:$0xff]  ;;  %v3314_v31 = vpack.c.bf16 %v1592_v27, %v1591_v26  ;;  %v2397_v27 = vld [vmem:[%s4234_s6] ss:$0 sm:$0xff] }
 0x153   : > { %3328 = vmatprep.subr.bf16.mxu1 %v3452_v30  ;;  %2935 = vmatprep.mubr.msk.f32.mxu0 %vm3453_vm6, %v3454_v61  ;;  %v3350_v32 = vpack.c.bf16 %v2336_v29, %v2335_v28 }
 0x154   : > { %2989 = vmatprep.mubr.msk.f32.mxu1 %vm3453_vm6, %v3454_v61 }
 0x155   : > { %3294 = vmatpush3.bf16.msra.mxu0 %v3293_v34  ;;  %v1594_v34 = vld [vmem:[%s4233_s5 + $0x38] sm:$0xff] }
 0x156   : > { %3330 = vmatpush3.bf16.msra.mxu1 %v3329_v36  ;;  %3295 = vmatprep.subr.bf16.mxu0 %v3452_v30  ;;  %v2338_v36 = vld [vmem:[%s4233_s5 + $0x158] sm:$0xff]  ;;  %v3317_v37 = vpack.c.bf16 %v1594_v34, %v1593_v33 }
 0x157   : > { %3331 = vmatprep.subr.bf16.mxu1 %v3452_v30  ;;  %v3353_v38 = vpack.c.bf16 %v2338_v36, %v2337_v35  ;;  %v2113_v35 = vld [vmem:[%s4235_s7] sm:$0x1] }
 0x159   : > { %3297 = vmatpush3.bf16.msra.mxu0 %v3296_v39  ;;  %v1595_v39 = vld [vmem:[%s4233_s5 + $0x40] sm:$0xff] }
 0x15a   : > { %3333 = vmatpush3.bf16.msra.mxu1 %v3332_v42  ;;  %3298 = vmatprep.subr.bf16.mxu0 %v3452_v30  ;;  %v2340_v42 = vld [vmem:[%s4233_s5 + $0x168] sm:$0xff]  ;;  %v3320_v43 = vpack.c.bf16 %v1596_v40, %v1595_v39 }
 0x15b   : > { %3334 = vmatprep.subr.bf16.mxu1 %v3452_v30  ;;  %v3356_v44 = vpack.c.bf16 %v2340_v42, %v2339_v41  ;;  %v2130_v42 = vlaneseq }
 0x15d   : > { %3300 = vmatpush3.bf16.msra.mxu0 %v3299_v46  ;;  %v1598_v46 = vld [vmem:[%s4233_s5 + $0x58] sm:$0xff] }
 0x15e   : > { %3336 = vmatpush3.bf16.msra.mxu1 %v3335_v48  ;;  %3301 = vmatprep.subr.bf16.mxu0 %v3452_v30  ;;  %v2342_v48 = vld [vmem:[%s4233_s5 + $0x178] sm:$0xff]  ;;  %v3323_v49 = vpack.c.bf16 %v1598_v46, %v1597_v45 }
 0x15f   : > { %3337 = vmatprep.subr.bf16.mxu1 %v3452_v30  ;;  %v3359_v50 = vpack.c.bf16 %v2342_v48, %v2341_v47  ;;  %v2112_v46 = vld [vmem:[#allocation4] sm:$0x1] }
 0x161   : > { %3303 = vmatpush3.bf16.msra.mxu0 %v3302_v52  ;;  %v2372_v52 = vld [vmem:[%s4233_s5 + $0xc8] sm:$0xff] }
 0x162   : > { %3339 = vmatpush3.bf16.msra.mxu1 %v3338_v54  ;;  %3304 = vmatprep.subr.bf16.mxu0 %v3452_v30  ;;  %v2385_v54 = vld [vmem:[%s4233_s5 + $0x1e8] sm:$0xff]  ;;  %v3362_v55 = vpack.c.bf16 %v2372_v52, %v2371_v51 }
 0x163   : > { %3340 = vmatprep.subr.bf16.mxu1 %v3452_v30  ;;  %v3380_v56 = vpack.c.bf16 %v2385_v54, %v2384_v53 }
 0x165   : > { %3306 = vmatpush3.bf16.msra.mxu0 %v3305_v58  ;;  %v2374_v58 = vld [vmem:[%s4233_s5 + $0xd8] sm:$0xff] }
 0x166   : > { %3342 = vmatpush3.bf16.msra.mxu1 %v3341_v60  ;;  %3307 = vmatprep.subr.bf16.mxu0 %v3452_v30  ;;  %v2387_v60 = vld [vmem:[%s4233_s5 + $0x1f8] sm:$0xff] }
 0x167   : > { %3343 = vmatprep.subr.bf16.mxu1 %v3452_v30 }
 0x222   : > { %v2877_v62 = vpop.f32.mrb[4].mxu0 }
 0x223   : > { %v2910_v63 = vpop.f32.mrb[4].mxu1  ;;  %v1451_v1 = vpop.f32.mrb[5].mxu0 }
 0x224   : > { %v1556_v2 = vmax.f32 %v2877_v62, %v2910_v63  ;;  %v1544_v3 = vpop.f32.mrb[5].mxu1  ;;  %v3365_v63 = vpack.c.bf16 %v2374_v58, %v2373_v57 }
 0x225   : > { %v1555_v4 = vmax.f32 %v1451_v1, %v1544_v3  ;;  %v2375_v1 = vld [vmem:[%s4233_s5 + $0xe0] sm:$0xff] }
 0x226   : > { %v1565_v5 = vadd.f32 %v2330_v0, %v1556_v2  ;;  %v2376_v2 = vld [vmem:[%s4233_s5 + $0xe8] sm:$0xff]  ;;  %v2388_v3 = vld [vmem:[%s4233_s5 + $0x200] sm:$0xff] }
 0x227   : > { %v1564_v6 = vadd.f32 %v2330_v0, %v1555_v4  ;;  %v3383_v0 = vpack.c.bf16 %v2387_v60, %v2386_v59  ;;  %v2389_v4 = vld [vmem:[%s4233_s5 + $0x208] sm:$0xff] }
 0x228   : > { %v1580_v7 = vrot.slane %v1565_v5, 1 }
 0x229   : > { %v1567_v8 = vrot.slane %v1564_v6, 1 }
 0x22a   : > { %v1582_v9 = vmax.f32 %v1565_v5, %v1580_v7  ;;  %v3368_v5 = vpack.c.bf16 %v2376_v2, %v2375_v1  ;;  %v2377_v7 = vld [vmem:[%s4233_s5 + $0xf0] sm:$0xff] }
 0x22b   : > { %v1569_v10 = vmax.f32 %v1564_v6, %v1567_v8  ;;  %v3386_v6 = vpack.c.bf16 %v2389_v4, %v2388_v3  ;;  %v2378_v8 = vld [vmem:[%s4233_s5 + $0xf8] sm:$0xff] }
 0x22c   : > { %v1583_v11 = vmax.f32 %v1582_v9, 0.0  ;;  %v2391_v9 = vld [vmem:[%s4233_s5 + $0x218] sm:$0xff] }
 0x22d   : > { %v1570_v12 = vmax.f32 %v1569_v10, 0.0  ;;  %v3371_v10 = vpack.c.bf16 %v2378_v8, %v2377_v7 }
 0x22e   : > { %1584 = vst.msk [vmem:[#allocation3 + $0x4] sm:$0x1] %vm1571_vm7, %v1583_v11 }
 0x22f   : > { %1585 = vst.msk [vmem:[#allocation3 + $0x3] sm:$0x4] %vm1573_vm8, %v1583_v11  ;;  %1574 = vst.msk [vmem:[#allocation3 - $0x1] sm:$0x4] %vm1573_vm8, %v1570_v12 }
 0x230   : > { %1572 = vst.msk [vmem:[#allocation3] sm:$0x1] %vm1571_vm7, %v1570_v12 }
 0x231   : > { %1576 = vst.msk [vmem:[#allocation3 - $0x2] sm:$0x10] %vm1575_vm9, %v1570_v12 }
 0x232   : > { %1578 = vst.msk [vmem:[#allocation3 - $0x3] sm:$0x40] %vm1577_vm10, %v1570_v12  ;;  %v2379_v12 = vld [vmem:[%s4233_s5 + $0x100] sm:$0xff] }
 0x233   : > { %v3374_v16 = vpack.c.bf16 %v2380_v13, %v2379_v12 }
 0x239   : > { %v1612_v23 = vld [vmem:[#allocation3 + $0x1] sm:$0xf] }
 0x23a   : > { %2936 = vmatmul.mubr.msk.f32.vlgmr.msra.gmra.mrb[6].mxu0 %vm1626_vm11, %v1612_v23  ;;  %2990 = vmatmul.mubr.msk.f32.vlgmr.msra.gmra.mrb[6].mxu1 %vm1626_vm11, %v1612_v23  ;;  %v1586_v62 = vld [vmem:[#allocation3] sm:$0xf]  ;;  %v3395_v23 = vpack.c.bf16 %v2395_v21, %v2394_v20 }
 0x23b   : > { %3309 = vmatpush3.bf16.msra.mxu0 %v3308_v17  ;;  %3345 = vmatpush3.bf16.msra.mxu1 %v3344_v18  ;;  %v3392_v17 = vpack.c.bf16 %v2393_v15, %v2392_v14  ;;  %v2381_v18 = vld [vmem:[%s4233_s5 + $0x110] sm:$0xff] }
 0x23c   : > { %3310 = vmatprep.subr.bf16.mxu0 %v3452_v30  ;;  %3346 = vmatprep.subr.bf16.mxu1 %v3452_v30  ;;  %v3377_v22 = vpack.c.bf16 %v2382_v19, %v2381_v18 }
 0x23d   : > { %2962 = vmatprep.mubr.msk.f32.mxu0 %vm3453_vm6, %v3454_v61  ;;  %3016 = vmatprep.mubr.msk.f32.mxu1 %vm3453_vm6, %v3454_v61 }
 0x23f   : > { %3312 = vmatpush3.bf16.msra.mxu0 %v3311_v24  ;;  %3348 = vmatpush3.bf16.msra.mxu1 %v3347_v25  ;;  %v1926_v24 = vld [vmem:[#allocation3 + $0x2] sm:$0xf] }
 0x240   : > { %3313 = vmatprep.subr.bf16.mxu0 %v3452_v30  ;;  %3349 = vmatprep.subr.bf16.mxu1 %v3452_v30 }
 0x243   : > { %3315 = vmatpush3.bf16.msra.mxu0 %v3314_v31  ;;  %3351 = vmatpush3.bf16.msra.mxu1 %v3350_v32 }
 0x244   : > { %3316 = vmatprep.subr.bf16.mxu0 %v3452_v30  ;;  %3352 = vmatprep.subr.bf16.mxu1 %v3452_v30 }
 0x247   : > { %3318 = vmatpush3.bf16.msra.mxu0 %v3317_v37  ;;  %3354 = vmatpush3.bf16.msra.mxu1 %v3353_v38 }
 0x248   : > { %3319 = vmatprep.subr.bf16.mxu0 %v3452_v30  ;;  %3355 = vmatprep.subr.bf16.mxu1 %v3452_v30 }
 0x24b   : > { %3321 = vmatpush3.bf16.msra.mxu0 %v3320_v43  ;;  %3357 = vmatpush3.bf16.msra.mxu1 %v3356_v44  ;;  %v2131_v43 = vshrl.u32 %v2130_v42, 7 }
 0x24c   : > { %3322 = vmatprep.subr.bf16.mxu0 %v3452_v30  ;;  %3358 = vmatprep.subr.bf16.mxu1 %v3452_v30 }
 0x24d   : > { %v2132_v45 = vsub.s32 2, %v2131_v43 }
 0x24f   : > { %3324 = vmatpush3.bf16.msra.mxu0 %v3323_v49  ;;  %3360 = vmatpush3.bf16.msra.mxu1 %v3359_v50 }
 0x250   : > { %3361 = vmatprep.subr.bf16.mxu0 %v3452_v30  ;;  %3379 = vmatprep.subr.bf16.mxu1 %v3452_v30 }
 0x252   : > { %2963 = vmatmul.mubr.msk.f32.vlgmr.msra.gmra.mrb[6].mxu0 %vm1626_vm11, %v1586_v62  ;;  %3017 = vmatmul.mubr.msk.f32.vlgmr.msra.gmra.mrb[6].mxu1 %vm1626_vm11, %v1586_v62 }
 0x253   : > { %3363 = vmatpush3.bf16.msra.mxu0 %v3362_v55  ;;  %3381 = vmatpush3.bf16.msra.mxu1 %v3380_v56 }
 0x254   : > { %3364 = vmatprep.subr.bf16.mxu0 %v3452_v30  ;;  %3382 = vmatprep.subr.bf16.mxu1 %v3452_v30 }
 0x255   : > { %3043 = vmatprep.mubr.msk.f32.mxu0 %vm3453_vm6, %v3454_v61  ;;  %3070 = vmatprep.mubr.msk.f32.mxu1 %vm3453_vm6, %v3454_v61  ;;  %v2390_v61 = vld [vmem:[%s4233_s5 + $0x210] sm:$0xff] }
 0x256   : > { %v3389_v11 = vpack.c.bf16 %v2391_v9, %v2390_v61 }
 0x257   : > { %3366 = vmatpush3.bf16.msra.mxu0 %v3365_v63  ;;  %3384 = vmatpush3.bf16.msra.mxu1 %v3383_v0 }
 0x258   : > { %3367 = vmatprep.subr.bf16.mxu0 %v3452_v30  ;;  %3385 = vmatprep.subr.bf16.mxu1 %v3452_v30 }
 0x25b   : > { %3369 = vmatpush3.bf16.msra.mxu0 %v3368_v5  ;;  %3387 = vmatpush3.bf16.msra.mxu1 %v3386_v6 }
 0x25c   : > { %3370 = vmatprep.subr.bf16.mxu0 %v3452_v30  ;;  %3388 = vmatprep.subr.bf16.mxu1 %v3452_v30 }
 0x25f   : > { %3372 = vmatpush3.bf16.msra.mxu0 %v3371_v10  ;;  %3390 = vmatpush3.bf16.msra.mxu1 %v3389_v11 }
 0x260   : > { %3373 = vmatprep.subr.bf16.mxu0 %v3452_v30  ;;  %3391 = vmatprep.subr.bf16.mxu1 %v3452_v30 }
 0x263   : > { %3375 = vmatpush3.bf16.msra.mxu0 %v3374_v16  ;;  %3393 = vmatpush3.bf16.msra.mxu1 %v3392_v17 }
 0x264   : > { %3376 = vmatprep.subr.bf16.mxu0 %v3452_v30  ;;  %3394 = vmatprep.subr.bf16.mxu1 %v3452_v30  ;;  %v2120_v30 = vld [vmem:[%s4235_s7 + $0x1] sm:$0x1] }
 0x265   : > { %v2122_v37 = vrot.slane %v2120_v30, 6 }
 0x267   : > { %3378 = vmatpush3.bf16.msra.mxu0 %v3377_v22  ;;  %3396 = vmatpush3.bf16.msra.mxu1 %v3395_v23 }
 0x26a   : > { %3044 = vmatmul.mubr.msk.f32.vlgmr.msra.gmra.mrb[6].mxu0 %vm1626_vm11, %v1926_v24  ;;  %3071 = vmatmul.mubr.msk.f32.vlgmr.msra.gmra.mrb[6].mxu1 %vm1626_vm11, %v1926_v24 }
 0x33d   : > { %v2009_v25 = vpop.f32.mrb[6].mxu0  ;;  %v2093_v26 = vpop.f32.mrb[6].mxu1 }
 0x33e   : > { %v2098_v28 = vmax.f32 %v2009_v25, %v2093_v26  ;;  %v3045_v29 = vpop.f32.mrb[7].mxu0  ;;  %v3072_v31 = vpop.f32.mrb[7].mxu1 }
 0x340   : > { %v2106_v32 = vadd.f32 %v2397_v27, %v2098_v28 }
 0x342   : > { %v2108_v33 = vrot.slane %v2106_v32, 1 }
 0x344   : > { %v2110_v34 = vmax.f32 %v2106_v32, %v2108_v33 }
 0x346   : > { %v2111_v36 = vmax.f32 %v2110_v34, 0.0 }
 0x348   : > { %v2114_v38 = vmul.f32 %v2113_v35, %v2111_v36  ;;  %v2124_v40 = vmul.f32 %v2122_v37, %v2111_v36 }
 0x34a   : > { %v2116_v39 = vsel %vm2115_vm12, %v2114_v38, 0.0  ;;  %v2126_v41 = vsel %vm2125_vm13, %v2124_v40, 0.0 }
 0x34b   : > { %2117 = vadd.xlane.f32.xlu0 %v2116_v39 }
 0x34f   : > { %2127 = vadd.xlane.f32.xlu0 %v2126_v41 }
 0x3d8   : > { %v2118_v44 = vpop.xlane.xlu0 %2117 }
 0x3d9   : > { %v2119_v48 = vadd.f32 %v2118_v44, %v2112_v46 }
 0x3dc   : > { %v2128_v47 = vpop.xlane.xlu0 %2127 }
 0x3dd   : > { %v2133_v49 = vrot.slane %v2128_v47, %v2132_v45 }
 0x3df   : > { %v2135_v50 = vadd.f32 %v2133_v49, %v2119_v48 }
 0x3e1   : > { %v2136_v51 = vsub.f32 0.0, %v2135_v50 }
 0x3e3   : > { %v2137_v52 = vmul.f32 1.442695, %v2136_v51 }
 0x3e5   : > { %3440 = vpow2.f32 %v2137_v52 }
 0x3ef   : > { %v3441_v53 = vpop.eup %3440 }
 0x3f0   : > { %v2139_v54 = vadd.f32 1.0, %v3441_v53 }
 0x3f2   : > { %3442 = vrcp.f32 %v2139_v54 }
 0x3fc   : > { %v3443_v55 = vpop.eup %3442 }
 0x3fd   : > { %2143 = vst.msk [vmem:[%s330_s22] sm:$0x1] %vm2142_vm14, %v3443_v55 }
 0x3fe PF: > { %s21_s11 = sadd.s32 1, %s3450_s11  }
 0x3ff   : > { %p18_p4 = scmp.ge.s32.totalorder %s21_s11, 4  }
 0x401   :  { %20 = sbr.rel (!%p18_p4) target bundleno = 3 (0x3), region = 101 }

</bundles_post_ra>
